<compile_context>
chip_gen: v6e
topology: v6e:2x2x1
jax: 0.10.0
libtpu: 0.0.40
codegen_flags: <defaults>
</compile_context>

<pallas_src>
import functools

import jax
import jax.numpy as jnp
from jax.experimental import pallas as pl
from jax.experimental.pallas import tpu as pltpu


_HIDDEN = 64      # fixed hidden width of the PyTorch module
_LANE = 128       # TPU lane width
_SUBLANE = 8      # fp32 sublane granularity


def _round_up(x, m):
    return ((x + m - 1) // m) * m


# ----------------------------------------------------------------------------- kernel

def _mlp(x, w1_ref, b1_ref, w2_ref, b2_ref, compute_dtype):
    """Linear -> ReLU -> Linear. bf16 MXU operands, fp32 accumulation."""
    h = jnp.dot(x, w1_ref[...], preferred_element_type=jnp.float32)
    h = h + b1_ref[...].astype(jnp.float32)
    h = jnp.maximum(h, 0.0).astype(compute_dtype)
    y = jnp.dot(h, w2_ref[...], preferred_element_type=jnp.float32)
    return y + b2_ref[...].astype(jnp.float32)


def mmae2omics_kernel(
    # inputs (all lane-padded)
    x1_ref, x2_ref,
    e1w1_ref, e1b1_ref, e1w2_ref, e1b2_ref,
    e2w1_ref, e2b1_ref, e2w2_ref, e2b2_ref,
    d1w1_ref, d1b1_ref, d1w2_ref, d1b2_ref,
    d2w1_ref, d2b1_ref, d2w2_ref, d2b2_ref,
    # outputs: latents + decoded only ("combined" is assembled in the wrapper)
    lat1_ref, lat2_ref, dec1_ref, dec2_ref,
    *, compute_dtype,
):
    cd = compute_dtype
    x1 = x1_ref[...].astype(cd)
    x2 = x2_ref[...].astype(cd)

    # Encoders (padded latent width; padded columns are exactly zero).
    latent1 = _mlp(x1, e1w1_ref, e1b1_ref, e1w2_ref, e1b2_ref, cd)  # (TB, LP) f32
    latent2 = _mlp(x2, e2w1_ref, e2b1_ref, e2w2_ref, e2b2_ref, cd)

    # Full-width, 128-aligned, unmasked lane-dense stores.
    lat1_ref[...] = latent1.astype(lat1_ref.dtype)
    lat2_ref[...] = latent2.astype(lat2_ref.dtype)

    # Decoders take the *unscaled* latents, exactly as in the PyTorch forward.
    decoded1 = _mlp(latent1.astype(cd), d1w1_ref, d1b1_ref, d1w2_ref, d1b2_ref, cd)
    decoded2 = _mlp(latent2.astype(cd), d2w1_ref, d2b1_ref, d2w2_ref, d2b2_ref, cd)

    # Decoded widths are lane-padded too -> unmasked stores (wrapper slices back).
    dec1_ref[...] = decoded1.astype(dec1_ref.dtype)
    dec2_ref[...] = decoded2.astype(dec2_ref.dtype)


# ------------------------------------------------------------------ wrapper-side helpers

def _pad2d(w, rows, cols, dtype):
    out = jnp.zeros((rows, cols), dtype)
    return out.at[: w.shape[0], : w.shape[1]].set(w.astype(dtype))


def prepare_params(params, in_dim1, in_dim2, latent_dim, *, weight_dtype=jnp.bfloat16):
    """Zero-pad every feature axis to a 128-lane multiple; cast weights to bf16.

    Call ONCE and reuse the result across forward calls (padding/casting all 16
    tensors per call would cost an extra XLA pass rivaling the kernel's traffic).

    Padding is exact: padded x columns meet zero e*w1 rows; padded hidden columns
    have zero weight + zero bias so ReLU(0)=0 meets zero rows of the second layer;
    padded latent columns are zero and meet zero decoder-first-layer rows; padded
    decoded columns come from zero d*w2 columns + zero bias and are sliced away.
    """
    hp = _round_up(_HIDDEN, _LANE)
    lp = _round_up(latent_dim, _LANE)
    i1p = _round_up(in_dim1, _LANE)
    i2p = _round_up(in_dim2, _LANE)
    f32 = jnp.float32
    p = {
        "e1w1": _pad2d(params["e1w1"], i1p, hp, weight_dtype),
        "e1b1": _pad2d(params["e1b1"], 1, hp, f32),
        "e1w2": _pad2d(params["e1w2"], hp, lp, weight_dtype),
        "e1b2": _pad2d(params["e1b2"], 1, lp, f32),
        "e2w1": _pad2d(params["e2w1"], i2p, hp, weight_dtype),
        "e2b1": _pad2d(params["e2b1"], 1, hp, f32),
        "e2w2": _pad2d(params["e2w2"], hp, lp, weight_dtype),
        "e2b2": _pad2d(params["e2b2"], 1, lp, f32),
        "d1w1": _pad2d(params["d1w1"], lp, hp, weight_dtype),
        "d1b1": _pad2d(params["d1b1"], 1, hp, f32),
        "d1w2": _pad2d(params["d1w2"], hp, i1p, weight_dtype),
        "d1b2": _pad2d(params["d1b2"], 1, i1p, f32),
        "d2w1": _pad2d(params["d2w1"], lp, hp, weight_dtype),
        "d2b1": _pad2d(params["d2b1"], 1, hp, f32),
        "d2w2": _pad2d(params["d2w2"], hp, i2p, weight_dtype),
        "d2b2": _pad2d(params["d2b2"], 1, i2p, f32),
    }
    dims = dict(in_dim1=in_dim1, in_dim2=in_dim2, latent_dim=latent_dim,
                hp=hp, lp=lp, i1p=i1p, i2p=i2p)
    return p, dims


def _vmem_capacity_bytes():
    """Generation-aware VMEM capacity (128 MiB v5e/v6e, 64 MiB v7x)."""
    try:
        return int(pltpu.get_tpu_info().vmem_capacity_bytes)
    except Exception:
        return 64 << 20   # conservative (v7x-sized) fallback


def _vmem_bytes(tb, i1p, i2p, hp, lp, x_bytes, out_bytes, w_bytes, weight_buffers=1):
    """VMEM footprint estimate.

    Activation tiles are counted double-buffered (their block index changes every
    grid step). Weight/bias blocks have a constant index_map, so the pipeline only
    fetches them once; they are counted with `weight_buffers` (1 for the tile
    picker, 2 when computing the vmem_limit headroom).
    """
    act = 2 * tb * ((i1p + i2p) * x_bytes + (2 * lp + i1p + i2p) * out_bytes)
    weights = weight_buffers * w_bytes * (2 * hp * (i1p + i2p) + 4 * hp * lp)
    biases = weight_buffers * 4 * (4 * hp + 2 * lp + i1p + i2p)
    return act + weights + biases


def _pick_batch_tile(batch, i1p, i2p, hp, lp, x_bytes, out_bytes, w_bytes, budget):
    """Largest batch tile (multiple of 8, <=2048) that fits the budget AND keeps
    the grid >=2 (typically >=4) steps so DMAs pipeline and v7x megacore shards."""
    if batch <= _SUBLANE:
        return batch
    pipeline_cap = max(_SUBLANE, _round_up(pl.cdiv(batch, 4), _SUBLANE))
    cap = min(_round_up(min(batch, 2048), _SUBLANE), pipeline_cap)
    cands = [c for c in (2048, 1024, 512, 256, 128, 64, 32, 16, 8) if c <= cap] or [cap]
    for cand in cands:
        if _vmem_bytes(cand, i1p, i2p, hp, lp, x_bytes, out_bytes, w_bytes) <= budget:
            return cand
    # TODO(synk): for very large in_dims (~>8-16k) add a second "arbitrary" grid axis
    # tiling the decoder output columns (and matching d*w2 column blocks) instead of
    # shrinking TB below 8 / exceeding the budget on v7x.
    return cands[-1]


# --------------------------------------------------------------------------- forward

def mmae2omics_forward(x1, x2, prepared, *, a=0.4, b=0.3,
                       out_dtype=jnp.float32,
                       compute_dtype=jnp.bfloat16):
    """Forward pass. `prepared` = prepare_params(...) output (pad/cast once, reuse)."""
    pp, dims = prepared
    batch = x1.shape[0]
    in_dim1, in_dim2 = dims["in_dim1"], dims["in_dim2"]
    latent_dim = dims["latent_dim"]
    hp, lp, i1p, i2p = dims["hp"], dims["lp"], dims["i1p"], dims["i2p"]

    # Lane-dense input blocks: zero-pad x columns to 128 multiples (exact: padded
    # columns meet zero weight rows in e*w1).
    x1p = jnp.pad(x1, ((0, 0), (0, i1p - in_dim1))) if i1p != in_dim1 else x1
    x2p = jnp.pad(x2, ((0, 0), (0, i2p - in_dim2))) if i2p != in_dim2 else x2

    x_bytes = jnp.dtype(x1.dtype).itemsize
    out_bytes = jnp.dtype(out_dtype).itemsize
    w_bytes = jnp.dtype(pp["e1w1"].dtype).itemsize

    vmem_cap = _vmem_capacity_bytes()
    budget = int(0.72 * vmem_cap)
    tb = _pick_batch_tile(batch, i1p, i2p, hp, lp, x_bytes, out_bytes, w_bytes, budget)
    grid = (pl.cdiv(batch, tb),)

    # vmem_limit: allow for weight blocks still being physically double-buffered,
    # +25% slack, but never claim more than 85% of physical VMEM (leaves
    # compiler-internal scratch headroom, which matters most on v7x's 64 MiB).
    est_hi = _vmem_bytes(tb, i1p, i2p, hp, lp, x_bytes, out_bytes, w_bytes,
                         weight_buffers=2)
    vmem_limit = int(min(max(int(est_hi * 1.25) + (2 << 20), 32 << 20),
                         int(0.85 * vmem_cap)))

    batch_map = lambda i: (i, 0)   # row-tiled activations
    const_map = lambda i: (0, 0)   # full-resident weights/biases (fetched once)

    param_order = ("e1w1", "e1b1", "e1w2", "e1b2",
                   "e2w1", "e2b1", "e2w2", "e2b2",
                   "d1w1", "d1b1", "d1w2", "d1b2",
                   "d2w1", "d2b1", "d2w2", "d2b2")
    flat_params = [pp[k] for k in param_order]

    in_specs = [
        pl.BlockSpec((tb, i1p), batch_map),
        pl.BlockSpec((tb, i2p), batch_map),
    ] + [pl.BlockSpec(w.shape, const_map) for w in flat_params]

    out_specs = (
        pl.BlockSpec((tb, lp), batch_map),    # latent1 (lane-padded)
        pl.BlockSpec((tb, lp), batch_map),    # latent2 (lane-padded)
        pl.BlockSpec((tb, i1p), batch_map),   # decoded1 (lane-padded)
        pl.BlockSpec((tb, i2p), batch_map),   # decoded2 (lane-padded)
    )
    out_shapes = (
        jax.ShapeDtypeStruct((batch, lp), out_dtype),
        jax.ShapeDtypeStruct((batch, lp), out_dtype),
        jax.ShapeDtypeStruct((batch, i1p), out_dtype),
        jax.ShapeDtypeStruct((batch, i2p), out_dtype),
    )

    kernel = functools.partial(mmae2omics_kernel, compute_dtype=compute_dtype)

    lat1_p, lat2_p, dec1_p, dec2_p = pl.pallas_call(
        kernel,
        grid=grid,
        in_specs=in_specs,
        out_specs=out_specs,
        out_shape=out_shapes,
        compiler_params=pltpu.CompilerParams(
            dimension_semantics=("parallel",),   # shard batch tiles over TCs (v7x megacore)
            vmem_limit_bytes=vmem_limit,
        ),
    )(x1p, x2p, *flat_params)

    # Slice padded outputs back to logical widths; build `combined` here from the
    # already-returned latents (no redundant padded HBM write in the kernel).
    lat1 = lat1_p[:, :latent_dim]
    lat2 = lat2_p[:, :latent_dim]
    dec1 = dec1_p[:, :in_dim1]
    dec2 = dec2_p[:, :in_dim2]
    combined = jnp.concatenate(
        [jnp.asarray(a, lat1.dtype) * lat1, jnp.asarray(b, lat2.dtype) * lat2], axis=1)
    return combined, lat1, lat2, dec1, dec2


# -------------------------------------------------------------------- init & reference

def _linear_init(key, fan_in, fan_out):
    """Mimics torch.nn.Linear default init: U[-1/sqrt(fan_in), 1/sqrt(fan_in)]."""
    kw, kb = jax.random.split(key)
    bound = 1.0 / jnp.sqrt(jnp.float32(fan_in))
    w = jax.random.uniform(kw, (fan_in, fan_out), jnp.float32, -bound, bound)
    bias = jax.random.uniform(kb, (1, fan_out), jnp.float32, -bound, bound)
    return w, bias


def make_params(key, in_dim1, in_dim2, latent_dim, hidden=_HIDDEN):
    keys = jax.random.split(key, 8)
    p = {}
    p["e1w1"], p["e1b1"] = _linear_init(keys[0], in_dim1, hidden)
    p["e1w2"], p["e1b2"] = _linear_init(keys[1], hidden, latent_dim)
    p["e2w1"], p["e2b1"] = _linear_init(keys[2], in_dim2, hidden)
    p["e2w2"], p["e2b2"] = _linear_init(keys[3], hidden, latent_dim)
    p["d1w1"], p["d1b1"] = _linear_init(keys[4], latent_dim, hidden)
    p["d1w2"], p["d1b2"] = _linear_init(keys[5], hidden, in_dim1)
    p["d2w1"], p["d2b1"] = _linear_init(keys[6], latent_dim, hidden)
    p["d2w2"], p["d2b2"] = _linear_init(keys[7], hidden, in_dim2)
    return p


def _reference_forward(x1, x2, p, *, a, b):
    """Pure-JAX fp32 reference matching the PyTorch module."""
    def mlp(x, w1, b1, w2, b2):
        return jnp.maximum(x @ w1 + b1, 0.0) @ w2 + b2
    l1 = mlp(x1, p["e1w1"], p["e1b1"], p["e1w2"], p["e1b2"])
    l2 = mlp(x2, p["e2w1"], p["e2b1"], p["e2w2"], p["e2b2"])
    comb = jnp.concatenate([a * l1, b * l2], axis=1)
    d1 = mlp(l1, p["d1w1"], p["d1b1"], p["d1w2"], p["d1b2"])
    d2 = mlp(l2, p["d2w1"], p["d2b1"], p["d2w2"], p["d2b2"])
    return comb, l1, l2, d1, d2


if __name__ == "__main__":
    # Small shapes consistent with the module's forward (hidden is fixed at 64).
    batch = 16
    in_dim1 = 40
    in_dim2 = 56
    latent_dim = 20
    a, b = 0.4, 0.3

    key = jax.random.PRNGKey(0)
    kx1, kx2, kp = jax.random.split(key, 3)
    x1 = jax.random.normal(kx1, (batch, in_dim1), jnp.float32)
    x2 = jax.random.normal(kx2, (batch, in_dim2), jnp.float32)
    params = make_params(kp, in_dim1, in_dim2, latent_dim)

    # Pad + bf16-cast all 16 weights ONCE (hoisted out of the per-call path).
    prepared = prepare_params(params, in_dim1, in_dim2, latent_dim)

    outs = mmae2omics_forward(x1, x2, prepared, a=a, b=b)
    outs = jax.block_until_ready(outs)

    # Sanity check against a pure-JAX fp32 reference. Precision contract: bf16 MXU
    # operands with fp32 accumulation -> tolerances loosened to ~2e-2.
    refs = _reference_forward(x1, x2, params, a=a, b=b)
    for o, r in zip(outs, refs):
        assert o.shape == r.shape, (o.shape, r.shape)
        assert jnp.allclose(o, r, atol=2e-2, rtol=2e-2), float(jnp.max(jnp.abs(o - r)))

    print("KERNEL_OK")
</pallas_src>

<mosaic_0001>
module attributes {stable_mosaic.version = 11 : i64} {
  func.func @mmae2omics_kernel(%arg0: i32, %arg1: memref<8x128xf32, #tpu.memory_space<vmem>>, %arg2: memref<8x128xf32, #tpu.memory_space<vmem>>, %arg3: memref<128x128xbf16, #tpu.memory_space<vmem>>, %arg4: memref<1x128xf32, #tpu.memory_space<vmem>>, %arg5: memref<128x128xbf16, #tpu.memory_space<vmem>>, %arg6: memref<1x128xf32, #tpu.memory_space<vmem>>, %arg7: memref<128x128xbf16, #tpu.memory_space<vmem>>, %arg8: memref<1x128xf32, #tpu.memory_space<vmem>>, %arg9: memref<128x128xbf16, #tpu.memory_space<vmem>>, %arg10: memref<1x128xf32, #tpu.memory_space<vmem>>, %arg11: memref<128x128xbf16, #tpu.memory_space<vmem>>, %arg12: memref<1x128xf32, #tpu.memory_space<vmem>>, %arg13: memref<128x128xbf16, #tpu.memory_space<vmem>>, %arg14: memref<1x128xf32, #tpu.memory_space<vmem>>, %arg15: memref<128x128xbf16, #tpu.memory_space<vmem>>, %arg16: memref<1x128xf32, #tpu.memory_space<vmem>>, %arg17: memref<128x128xbf16, #tpu.memory_space<vmem>>, %arg18: memref<1x128xf32, #tpu.memory_space<vmem>>, %arg19: memref<8x128xf32, #tpu.memory_space<vmem>>, %arg20: memref<8x128xf32, #tpu.memory_space<vmem>>, %arg21: memref<8x128xf32, #tpu.memory_space<vmem>>, %arg22: memref<8x128xf32, #tpu.memory_space<vmem>>) attributes {dimension_semantics = [#tpu.dimension_semantics<parallel>], iteration_bounds = array<i64: 2>, scalar_prefetch = 0 : i64, scratch_operands = 0 : i64, tpu.core_type = #tpu.core_type<tc>, window_params = [{transform_indices = @transform_0, window_bounds = array<i64: 8, 128>}, {transform_indices = @transform_1, window_bounds = array<i64: 8, 128>}, {pipeline_mode = #tpu.pipeline_mode<synchronous>, transform_indices = @transform_2, window_bounds = array<i64: 128, 128>}, {pipeline_mode = #tpu.pipeline_mode<synchronous>, transform_indices = @transform_3, window_bounds = array<i64: 1, 128>}, {pipeline_mode = #tpu.pipeline_mode<synchronous>, transform_indices = @transform_4, window_bounds = array<i64: 128, 128>}, {pipeline_mode = #tpu.pipeline_mode<synchronous>, transform_indices = @transform_5, window_bounds = array<i64: 1, 128>}, {pipeline_mode = #tpu.pipeline_mode<synchronous>, transform_indices = @transform_6, window_bounds = array<i64: 128, 128>}, {pipeline_mode = #tpu.pipeline_mode<synchronous>, transform_indices = @transform_7, window_bounds = array<i64: 1, 128>}, {pipeline_mode = #tpu.pipeline_mode<synchronous>, transform_indices = @transform_8, window_bounds = array<i64: 128, 128>}, {pipeline_mode = #tpu.pipeline_mode<synchronous>, transform_indices = @transform_9, window_bounds = array<i64: 1, 128>}, {pipeline_mode = #tpu.pipeline_mode<synchronous>, transform_indices = @transform_10, window_bounds = array<i64: 128, 128>}, {pipeline_mode = #tpu.pipeline_mode<synchronous>, transform_indices = @transform_11, window_bounds = array<i64: 1, 128>}, {pipeline_mode = #tpu.pipeline_mode<synchronous>, transform_indices = @transform_12, window_bounds = array<i64: 128, 128>}, {pipeline_mode = #tpu.pipeline_mode<synchronous>, transform_indices = @transform_13, window_bounds = array<i64: 1, 128>}, {pipeline_mode = #tpu.pipeline_mode<synchronous>, transform_indices = @transform_14, window_bounds = array<i64: 128, 128>}, {pipeline_mode = #tpu.pipeline_mode<synchronous>, transform_indices = @transform_15, window_bounds = array<i64: 1, 128>}, {pipeline_mode = #tpu.pipeline_mode<synchronous>, transform_indices = @transform_16, window_bounds = array<i64: 128, 128>}, {pipeline_mode = #tpu.pipeline_mode<synchronous>, transform_indices = @transform_17, window_bounds = array<i64: 1, 128>}, {transform_indices = @transform_18, window_bounds = array<i64: 8, 128>}, {transform_indices = @transform_19, window_bounds = array<i64: 8, 128>}, {transform_indices = @transform_20, window_bounds = array<i64: 8, 128>}, {transform_indices = @transform_21, window_bounds = array<i64: 8, 128>}]} {
    %c0 = arith.constant 0 : index
    %c0_0 = arith.constant 0 : index
    %0 = vector.load %arg1[%c0, %c0_0] : memref<8x128xf32, #tpu.memory_space<vmem>>, vector<8x128xf32>
    %1 = arith.truncf %0 : vector<8x128xf32> to vector<8x128xbf16>
    %c0_1 = arith.constant 0 : index
    %c0_2 = arith.constant 0 : index
    %2 = vector.load %arg2[%c0_1, %c0_2] : memref<8x128xf32, #tpu.memory_space<vmem>>, vector<8x128xf32>
    %3 = arith.truncf %2 : vector<8x128xf32> to vector<8x128xbf16>
    %c0_3 = arith.constant 0 : index
    %c0_4 = arith.constant 0 : index
    %4 = vector.load %arg3[%c0_3, %c0_4] : memref<128x128xbf16, #tpu.memory_space<vmem>>, vector<128x128xbf16>
    %cst = arith.constant dense<0.000000e+00> : vector<8x128xf32>
    %5 = tpu.matmul %1, %4, %cst {dimension_numbers = #tpu.dot_dimension_numbers<[1], [0], [0], [1], [0, 0, 1, 1], [], []>} : vector<8x128xbf16>, vector<128x128xbf16>, vector<8x128xf32> -> vector<8x128xf32>
    %c0_5 = arith.constant 0 : index
    %c0_6 = arith.constant 0 : index
    %6 = vector.load %arg4[%c0_5, %c0_6] : memref<1x128xf32, #tpu.memory_space<vmem>>, vector<1x128xf32>
    %7 = vector.broadcast %6 : vector<1x128xf32> to vector<8x128xf32>
    %8 = arith.addf %5, %7 : vector<8x128xf32>
    %cst_7 = arith.constant 0.000000e+00 : f32
    %9 = vector.broadcast %cst_7 : f32 to vector<8x128xf32>
    %10 = arith.maximumf %8, %9 : vector<8x128xf32>
    %11 = arith.truncf %10 : vector<8x128xf32> to vector<8x128xbf16>
    %c0_8 = arith.constant 0 : index
    %c0_9 = arith.constant 0 : index
    %12 = vector.load %arg5[%c0_8, %c0_9] : memref<128x128xbf16, #tpu.memory_space<vmem>>, vector<128x128xbf16>
    %cst_10 = arith.constant dense<0.000000e+00> : vector<8x128xf32>
    %13 = tpu.matmul %11, %12, %cst_10 {dimension_numbers = #tpu.dot_dimension_numbers<[1], [0], [0], [1], [0, 0, 1, 1], [], []>} : vector<8x128xbf16>, vector<128x128xbf16>, vector<8x128xf32> -> vector<8x128xf32>
    %c0_11 = arith.constant 0 : index
    %c0_12 = arith.constant 0 : index
    %14 = vector.load %arg6[%c0_11, %c0_12] : memref<1x128xf32, #tpu.memory_space<vmem>>, vector<1x128xf32>
    %15 = vector.broadcast %14 : vector<1x128xf32> to vector<8x128xf32>
    %16 = arith.addf %13, %15 : vector<8x128xf32>
    %c0_13 = arith.constant 0 : index
    %c0_14 = arith.constant 0 : index
    %17 = vector.load %arg7[%c0_13, %c0_14] : memref<128x128xbf16, #tpu.memory_space<vmem>>, vector<128x128xbf16>
    %cst_15 = arith.constant dense<0.000000e+00> : vector<8x128xf32>
    %18 = tpu.matmul %3, %17, %cst_15 {dimension_numbers = #tpu.dot_dimension_numbers<[1], [0], [0], [1], [0, 0, 1, 1], [], []>} : vector<8x128xbf16>, vector<128x128xbf16>, vector<8x128xf32> -> vector<8x128xf32>
    %c0_16 = arith.constant 0 : index
    %c0_17 = arith.constant 0 : index
    %19 = vector.load %arg8[%c0_16, %c0_17] : memref<1x128xf32, #tpu.memory_space<vmem>>, vector<1x128xf32>
    %20 = vector.broadcast %19 : vector<1x128xf32> to vector<8x128xf32>
    %21 = arith.addf %18, %20 : vector<8x128xf32>
    %cst_18 = arith.constant 0.000000e+00 : f32
    %22 = vector.broadcast %cst_18 : f32 to vector<8x128xf32>
    %23 = arith.maximumf %21, %22 : vector<8x128xf32>
    %24 = arith.truncf %23 : vector<8x128xf32> to vector<8x128xbf16>
    %c0_19 = arith.constant 0 : index
    %c0_20 = arith.constant 0 : index
    %25 = vector.load %arg9[%c0_19, %c0_20] : memref<128x128xbf16, #tpu.memory_space<vmem>>, vector<128x128xbf16>
    %cst_21 = arith.constant dense<0.000000e+00> : vector<8x128xf32>
    %26 = tpu.matmul %24, %25, %cst_21 {dimension_numbers = #tpu.dot_dimension_numbers<[1], [0], [0], [1], [0, 0, 1, 1], [], []>} : vector<8x128xbf16>, vector<128x128xbf16>, vector<8x128xf32> -> vector<8x128xf32>
    %c0_22 = arith.constant 0 : index
    %c0_23 = arith.constant 0 : index
    %27 = vector.load %arg10[%c0_22, %c0_23] : memref<1x128xf32, #tpu.memory_space<vmem>>, vector<1x128xf32>
    %28 = vector.broadcast %27 : vector<1x128xf32> to vector<8x128xf32>
    %29 = arith.addf %26, %28 : vector<8x128xf32>
    %c0_24 = arith.constant 0 : index
    %c0_25 = arith.constant 0 : index
    %30 = vector.load %arg19[%c0_24, %c0_25] : memref<8x128xf32, #tpu.memory_space<vmem>>, vector<8x128xf32>
    tpu.vector_store %arg19[%c0_24, %c0_25], %16 {strides = array<i32>} : memref<8x128xf32, #tpu.memory_space<vmem>>, vector<8x128xf32>,
    %c0_26 = arith.constant 0 : index
    %c0_27 = arith.constant 0 : index
    %31 = vector.load %arg20[%c0_26, %c0_27] : memref<8x128xf32, #tpu.memory_space<vmem>>, vector<8x128xf32>
    tpu.vector_store %arg20[%c0_26, %c0_27], %29 {strides = array<i32>} : memref<8x128xf32, #tpu.memory_space<vmem>>, vector<8x128xf32>,
    %32 = arith.truncf %16 : vector<8x128xf32> to vector<8x128xbf16>
    %c0_28 = arith.constant 0 : index
    %c0_29 = arith.constant 0 : index
    %33 = vector.load %arg11[%c0_28, %c0_29] : memref<128x128xbf16, #tpu.memory_space<vmem>>, vector<128x128xbf16>
    %cst_30 = arith.constant dense<0.000000e+00> : vector<8x128xf32>
    %34 = tpu.matmul %32, %33, %cst_30 {dimension_numbers = #tpu.dot_dimension_numbers<[1], [0], [0], [1], [0, 0, 1, 1], [], []>} : vector<8x128xbf16>, vector<128x128xbf16>, vector<8x128xf32> -> vector<8x128xf32>
    %c0_31 = arith.constant 0 : index
    %c0_32 = arith.constant 0 : index
    %35 = vector.load %arg12[%c0_31, %c0_32] : memref<1x128xf32, #tpu.memory_space<vmem>>, vector<1x128xf32>
    %36 = vector.broadcast %35 : vector<1x128xf32> to vector<8x128xf32>
    %37 = arith.addf %34, %36 : vector<8x128xf32>
    %cst_33 = arith.constant 0.000000e+00 : f32
    %38 = vector.broadcast %cst_33 : f32 to vector<8x128xf32>
    %39 = arith.maximumf %37, %38 : vector<8x128xf32>
    %40 = arith.truncf %39 : vector<8x128xf32> to vector<8x128xbf16>
    %c0_34 = arith.constant 0 : index
    %c0_35 = arith.constant 0 : index
    %41 = vector.load %arg13[%c0_34, %c0_35] : memref<128x128xbf16, #tpu.memory_space<vmem>>, vector<128x128xbf16>
    %cst_36 = arith.constant dense<0.000000e+00> : vector<8x128xf32>
    %42 = tpu.matmul %40, %41, %cst_36 {dimension_numbers = #tpu.dot_dimension_numbers<[1], [0], [0], [1], [0, 0, 1, 1], [], []>} : vector<8x128xbf16>, vector<128x128xbf16>, vector<8x128xf32> -> vector<8x128xf32>
    %c0_37 = arith.constant 0 : index
    %c0_38 = arith.constant 0 : index
    %43 = vector.load %arg14[%c0_37, %c0_38] : memref<1x128xf32, #tpu.memory_space<vmem>>, vector<1x128xf32>
    %44 = vector.broadcast %43 : vector<1x128xf32> to vector<8x128xf32>
    %45 = arith.addf %42, %44 : vector<8x128xf32>
    %46 = arith.truncf %29 : vector<8x128xf32> to vector<8x128xbf16>
    %c0_39 = arith.constant 0 : index
    %c0_40 = arith.constant 0 : index
    %47 = vector.load %arg15[%c0_39, %c0_40] : memref<128x128xbf16, #tpu.memory_space<vmem>>, vector<128x128xbf16>
    %cst_41 = arith.constant dense<0.000000e+00> : vector<8x128xf32>
    %48 = tpu.matmul %46, %47, %cst_41 {dimension_numbers = #tpu.dot_dimension_numbers<[1], [0], [0], [1], [0, 0, 1, 1], [], []>} : vector<8x128xbf16>, vector<128x128xbf16>, vector<8x128xf32> -> vector<8x128xf32>
    %c0_42 = arith.constant 0 : index
    %c0_43 = arith.constant 0 : index
    %49 = vector.load %arg16[%c0_42, %c0_43] : memref<1x128xf32, #tpu.memory_space<vmem>>, vector<1x128xf32>
    %50 = vector.broadcast %49 : vector<1x128xf32> to vector<8x128xf32>
    %51 = arith.addf %48, %50 : vector<8x128xf32>
    %cst_44 = arith.constant 0.000000e+00 : f32
    %52 = vector.broadcast %cst_44 : f32 to vector<8x128xf32>
    %53 = arith.maximumf %51, %52 : vector<8x128xf32>
    %54 = arith.truncf %53 : vector<8x128xf32> to vector<8x128xbf16>
    %c0_45 = arith.constant 0 : index
    %c0_46 = arith.constant 0 : index
    %55 = vector.load %arg17[%c0_45, %c0_46] : memref<128x128xbf16, #tpu.memory_space<vmem>>, vector<128x128xbf16>
    %cst_47 = arith.constant dense<0.000000e+00> : vector<8x128xf32>
    %56 = tpu.matmul %54, %55, %cst_47 {dimension_numbers = #tpu.dot_dimension_numbers<[1], [0], [0], [1], [0, 0, 1, 1], [], []>} : vector<8x128xbf16>, vector<128x128xbf16>, vector<8x128xf32> -> vector<8x128xf32>
    %c0_48 = arith.constant 0 : index
    %c0_49 = arith.constant 0 : index
    %57 = vector.load %arg18[%c0_48, %c0_49] : memref<1x128xf32, #tpu.memory_space<vmem>>, vector<1x128xf32>
    %58 = vector.broadcast %57 : vector<1x128xf32> to vector<8x128xf32>
    %59 = arith.addf %56, %58 : vector<8x128xf32>
    %c0_50 = arith.constant 0 : index
    %c0_51 = arith.constant 0 : index
    %60 = vector.load %arg21[%c0_50, %c0_51] : memref<8x128xf32, #tpu.memory_space<vmem>>, vector<8x128xf32>
    tpu.vector_store %arg21[%c0_50, %c0_51], %45 {strides = array<i32>} : memref<8x128xf32, #tpu.memory_space<vmem>>, vector<8x128xf32>,
    %c0_52 = arith.constant 0 : index
    %c0_53 = arith.constant 0 : index
    %61 = vector.load %arg22[%c0_52, %c0_53] : memref<8x128xf32, #tpu.memory_space<vmem>>, vector<8x128xf32>
    tpu.vector_store %arg22[%c0_52, %c0_53], %59 {strides = array<i32>} : memref<8x128xf32, #tpu.memory_space<vmem>>, vector<8x128xf32>,
    return
  }
  func.func @transform_0(%arg0: i32) -> (i32, i32) {
    %c0_i32 = arith.constant 0 : i32
    %c0_i32_0 = arith.constant 0 : i32
    return %arg0, %c0_i32 : i32, i32
  }
  func.func @transform_1(%arg0: i32) -> (i32, i32) {
    %c0_i32 = arith.constant 0 : i32
    %c0_i32_0 = arith.constant 0 : i32
    return %arg0, %c0_i32 : i32, i32
  }
  func.func @transform_2(%arg0: i32) -> (i32, i32) {
    %c0_i32 = arith.constant 0 : i32
    %c0_i32_0 = arith.constant 0 : i32
    %c0_i32_1 = arith.constant 0 : i32
    return %c0_i32, %c0_i32_0 : i32, i32
  }
  func.func @transform_3(%arg0: i32) -> (i32, i32) {
    %c0_i32 = arith.constant 0 : i32
    %c0_i32_0 = arith.constant 0 : i32
    %c0_i32_1 = arith.constant 0 : i32
    return %c0_i32, %c0_i32_0 : i32, i32
  }
  func.func @transform_4(%arg0: i32) -> (i32, i32) {
    %c0_i32 = arith.constant 0 : i32
    %c0_i32_0 = arith.constant 0 : i32
    %c0_i32_1 = arith.constant 0 : i32
    return %c0_i32, %c0_i32_0 : i32, i32
  }
  func.func @transform_5(%arg0: i32) -> (i32, i32) {
    %c0_i32 = arith.constant 0 : i32
    %c0_i32_0 = arith.constant 0 : i32
    %c0_i32_1 = arith.constant 0 : i32
    return %c0_i32, %c0_i32_0 : i32, i32
  }
  func.func @transform_6(%arg0: i32) -> (i32, i32) {
    %c0_i32 = arith.constant 0 : i32
    %c0_i32_0 = arith.constant 0 : i32
    %c0_i32_1 = arith.constant 0 : i32
    return %c0_i32, %c0_i32_0 : i32, i32
  }
  func.func @transform_7(%arg0: i32) -> (i32, i32) {
    %c0_i32 = arith.constant 0 : i32
    %c0_i32_0 = arith.constant 0 : i32
    %c0_i32_1 = arith.constant 0 : i32
    return %c0_i32, %c0_i32_0 : i32, i32
  }
  func.func @transform_8(%arg0: i32) -> (i32, i32) {
    %c0_i32 = arith.constant 0 : i32
    %c0_i32_0 = arith.constant 0 : i32
    %c0_i32_1 = arith.constant 0 : i32
    return %c0_i32, %c0_i32_0 : i32, i32
  }
  func.func @transform_9(%arg0: i32) -> (i32, i32) {
    %c0_i32 = arith.constant 0 : i32
    %c0_i32_0 = arith.constant 0 : i32
    %c0_i32_1 = arith.constant 0 : i32
    return %c0_i32, %c0_i32_0 : i32, i32
  }
  func.func @transform_10(%arg0: i32) -> (i32, i32) {
    %c0_i32 = arith.constant 0 : i32
    %c0_i32_0 = arith.constant 0 : i32
    %c0_i32_1 = arith.constant 0 : i32
    return %c0_i32, %c0_i32_0 : i32, i32
  }
  func.func @transform_11(%arg0: i32) -> (i32, i32) {
    %c0_i32 = arith.constant 0 : i32
    %c0_i32_0 = arith.constant 0 : i32
    %c0_i32_1 = arith.constant 0 : i32
    return %c0_i32, %c0_i32_0 : i32, i32
  }
  func.func @transform_12(%arg0: i32) -> (i32, i32) {
    %c0_i32 = arith.constant 0 : i32
    %c0_i32_0 = arith.constant 0 : i32
    %c0_i32_1 = arith.constant 0 : i32
    return %c0_i32, %c0_i32_0 : i32, i32
  }
  func.func @transform_13(%arg0: i32) -> (i32, i32) {
    %c0_i32 = arith.constant 0 : i32
    %c0_i32_0 = arith.constant 0 : i32
    %c0_i32_1 = arith.constant 0 : i32
    return %c0_i32, %c0_i32_0 : i32, i32
  }
  func.func @transform_14(%arg0: i32) -> (i32, i32) {
    %c0_i32 = arith.constant 0 : i32
    %c0_i32_0 = arith.constant 0 : i32
    %c0_i32_1 = arith.constant 0 : i32
    return %c0_i32, %c0_i32_0 : i32, i32
  }
  func.func @transform_15(%arg0: i32) -> (i32, i32) {
    %c0_i32 = arith.constant 0 : i32
    %c0_i32_0 = arith.constant 0 : i32
    %c0_i32_1 = arith.constant 0 : i32
    return %c0_i32, %c0_i32_0 : i32, i32
  }
  func.func @transform_16(%arg0: i32) -> (i32, i32) {
    %c0_i32 = arith.constant 0 : i32
    %c0_i32_0 = arith.constant 0 : i32
    %c0_i32_1 = arith.constant 0 : i32
    return %c0_i32, %c0_i32_0 : i32, i32
  }
  func.func @transform_17(%arg0: i32) -> (i32, i32) {
    %c0_i32 = arith.constant 0 : i32
    %c0_i32_0 = arith.constant 0 : i32
    %c0_i32_1 = arith.constant 0 : i32
    return %c0_i32, %c0_i32_0 : i32, i32
  }
  func.func @transform_18(%arg0: i32) -> (i32, i32) {
    %c0_i32 = arith.constant 0 : i32
    %c0_i32_0 = arith.constant 0 : i32
    return %arg0, %c0_i32 : i32, i32
  }
  func.func @transform_19(%arg0: i32) -> (i32, i32) {
    %c0_i32 = arith.constant 0 : i32
    %c0_i32_0 = arith.constant 0 : i32
    return %arg0, %c0_i32 : i32, i32
  }
  func.func @transform_20(%arg0: i32) -> (i32, i32) {
    %c0_i32 = arith.constant 0 : i32
    %c0_i32_0 = arith.constant 0 : i32
    return %arg0, %c0_i32 : i32, i32
  }
  func.func @transform_21(%arg0: i32) -> (i32, i32) {
    %c0_i32 = arith.constant 0 : i32
    %c0_i32_0 = arith.constant 0 : i32
    return %arg0, %c0_i32 : i32, i32
  }
}

</mosaic_0001>

<bundles_post_ra>
// kernel: tpu_custom_call.1
= control target key start
LH: loop header
LB: loop body
LE: loop exit
PB: predicated region body
PF: predicated region fallthrough
CT: control target
= control target key end

     0   :  { %s3737_s0 = inlined_call_operand.hbm [shape: f32[16,128], index: 0, kind: input, shape index: {}]   ;;  %s3738_s1 = inlined_call_operand.hbm [shape: f32[16,128], index: 1, kind: input, shape index: {}]   ;;  %s3739_s2 = inlined_call_operand.hbm [shape: bf16[128,128], index: 2, kind: input, shape index: {}]   ;;  %s3740_s3 = inlined_call_operand.vmem [shape: f32[1,128], index: 3, kind: input, shape index: {}]   ;;  %s3741_s4 = inlined_call_operand.hbm [shape: bf16[128,128], index: 4, kind: input, shape index: {}]   ;;  %s3742_s5 = inlined_call_operand.vmem [shape: f32[1,128], index: 5, kind: input, shape index: {}]   ;;  %s3743_s6 = inlined_call_operand.hbm [shape: bf16[128,128], index: 6, kind: input, shape index: {}]   ;;  %s3744_s7 = inlined_call_operand.vmem [shape: f32[1,128], index: 7, kind: input, shape index: {}]   ;;  %s3745_s8 = inlined_call_operand.hbm [shape: bf16[128,128], index: 8, kind: input, shape index: {}]   ;;  %s3746_s9 = inlined_call_operand.vmem [shape: f32[1,128], index: 9, kind: input, shape index: {}]   ;;  %s3747_s10 = inlined_call_operand.hbm [shape: bf16[128,128], index: 10, kind: input, shape index: {}]   ;;  %s3748_s11 = inlined_call_operand.vmem [shape: f32[1,128], index: 11, kind: input, shape index: {}]   ;;  %s3749_s12 = inlined_call_operand.hbm [shape: bf16[128,128], index: 12, kind: input, shape index: {}]   ;;  %s3750_s13 = inlined_call_operand.vmem [shape: f32[1,128], index: 13, kind: input, shape index: {}]   ;;  %s3751_s14 = inlined_call_operand.hbm [shape: bf16[128,128], index: 14, kind: input, shape index: {}]   ;;  %s3752_s15 = inlined_call_operand.vmem [shape: f32[1,128], index: 15, kind: input, shape index: {}]   ;;  %s3753_s16 = inlined_call_operand.hbm [shape: bf16[128,128], index: 16, kind: input, shape index: {}]   ;;  %s3754_s17 = inlined_call_operand.vmem [shape: f32[1,128], index: 17, kind: input, shape index: {}]   ;;  %s3755_s18 = inlined_call_operand.hbm [shape: f32[16,128], index: 18, kind: output, shape index: {0}]   ;;  %s3756_s19 = inlined_call_operand.hbm [shape: f32[16,128], index: 19, kind: output, shape index: {1}]   ;;  %s3757_s20 = inlined_call_operand.hbm [shape: f32[16,128], index: 20, kind: output, shape index: {2}]   ;;  %s3758_s21 = inlined_call_operand.hbm [shape: f32[16,128], index: 21, kind: output, shape index: {3}]  }
   0x1   :  { %3773 = sst [smem:[#allocation40_spill]] %s3737_s0 }
   0x2   :  { %3774 = sst [smem:[#allocation41_spill]] %s3738_s1 }
   0x3   :  { %3775 = sst [smem:[#allocation42_spill]] %s3739_s2 }
   0x4   :  { %3776 = sst [smem:[#allocation43_spill]] %s3740_s3 }
   0x5   :  { %3777 = sst [smem:[#allocation44_spill]] %s3741_s4 }
   0x6   :  { %3778 = sst [smem:[#allocation45_spill]] %s3742_s5 }
   0x7   :  { %3779 = sst [smem:[#allocation46_spill]] %s3743_s6 }
   0x8   :  { %3780 = sst [smem:[#allocation47_spill]] %s3745_s8 }
   0x9   :  { %3781 = sst [smem:[#allocation48_spill]] %s3747_s10 }
   0xa   :  { %3782 = sst [smem:[#allocation49_spill]] %s3749_s12 }
   0xb   :  { %3783 = sst [smem:[#allocation50_spill]] %s3751_s14 }
   0xc   :  { %3784 = sst [smem:[#allocation51_spill]] %s3753_s16 }
   0xd   :  { %3785 = sst [smem:[#allocation52_spill]] %s3754_s17 }
   0xe   :  { %3786 = sst [smem:[#allocation53_spill]] %s3757_s20 }
   0xf   :  { %3787 = sst [smem:[#allocation54_spill]] %s3758_s21 }
  0x10   :  { %27 = vsyncpa [#allocation3], 0 }
  0x11   :  { %29 = vsyncpa [#allocation3 + $0x1], 0 }
  0x12   :  { %30 = vsyncpa [#allocation6], 0 }
  0x13   :  { %32 = vsyncpa [#allocation6 + $0x1], 0 }
  0x14   :  { %33 = vsyncpa [#allocation9], 0 }
  0x15   :  { %34 = vsyncpa [#allocation12], 0 }
  0x16   :  { %35 = vsyncpa [#allocation15], 0 }
  0x17   :  { %36 = vsyncpa [#allocation18], 0 }
  0x18   :  { %37 = vsyncpa [#allocation4], 0 }
  0x19   :  { %39 = vsyncpa [#allocation4 + $0x1], 0 }
  0x1a   :  { %40 = vsyncpa [#allocation21], 0 }
  0x1b   :  { %42 = vsyncpa [#allocation21 + $0x1], 0 }
  0x1c   :  { %43 = vsyncpa [#allocation24], 0 }
  0x1d   :  { %45 = vsyncpa [#allocation24 + $0x1], 0  ;;  %s3217_s2 = smov 0   ;;  %s3219_s25 = smov 0  }
  0x1e   :  { %s3221_s26 = smov 0   ;;  %s3223_s27 = smov 0  }
  0x1f LB: > { %3788 = sst [smem:[#allocation35_spill]] %s3075_s2  ;;  %s3089_s3 = smov [#allocation7]   ;;  %s3087_s27 = sphi %s3223_s27, %s3834_s27   ;;  %s3083_s26 = sphi %s3221_s26, %s3836_s26   ;;  %s3079_s25 = sphi %s3219_s25, %s3838_s25   ;;  %s3075_s2 = sphi %s3217_s2, %s3837_s2  }
  0x20   : > { %3789 = sst [smem:[#allocation36_spill]] %s3083_s26  ;;  %s560_s28 = sshll.u32 %s3089_s3, 4  ;;  %s561_s28 = int_to_ptr.vmem [resolvable:$true] %s560_s28 }
  0x21   : > { %s3238_s29 = sadd.s32 4294967295, %s3087_s27   ;;  %p2091_p0 = scmp.ge.s32.totalorder %s3087_s27, 1 }
  0x22   : > { %p3769_p1 = scmp.eq.s32.totalorder %s3238_s29, 0  ;;  %p548_p2 = scmp.lt.s32.totalorder %s3087_s27, 3 }
  0x23   : > { %s3090_s4 = smov [#allocation8]   ;;  %s3091_s22 = smov [#allocation11]  }
  0x24   : > { %p3243_p3 = pnand %p2091_p0, %p548_p2  ;;  %s576_s30 = sshll.u32 %s3090_s4, 4  ;;  %s3256_s30 = int_to_ptr.vmem [resolvable:$true] %s576_s30 }
  0x25   : > { %s608_s23 = sshll.u32 %s3091_s22, 4  ;;  %s2660_s24 = scalar_lea.vmem %s561_s28, 1024  ;;  %s3258_s23 = int_to_ptr.vmem [resolvable:$true] %s608_s23 }
  0x26   : > { %s3790_s0 = scalar_select %p3243_p3, 1, 0 }
  0x27   : > { %p2478_p5 = pneg %p3243_p3  ;;  %p2661_p8 = scmp.ne.s32.totalorder %s561_s28, %s2660_s24 }
  0x28   : > { %p2668_p11 = scmp.lt.s32.totalorder %s561_s28, %s561_s28  ;;  %p2669_p12 = scmp.lt.s32.totalorder %s2660_s24, %s2660_s24 }
  0x29   : > { %p3252_p6 = pnand %p2478_p5, %p3769_p1 }
  0x2a   : > { %p2670_p13 = por %p2669_p12, %p2668_p11 }
  0x2b   : > { %p3262_p7 = pneg %p3252_p6 }
  0x2d   : > { %p2663_p9 = pnand %p2661_p8, %p3262_p7 }
  0x2f   : > { %p2664_p10 = pneg %p2663_p9 }
  0x31   : > { %p2671_p0 = pnand %p2670_p13, %p2664_p10 }
  0x33   : > { %2674 = shalt.err (!%p2671_p0)
}
  0x34   : > { %s3092_s3 = smov 64   ;;  %s3093_s4 = smov 4  }
  0x35   : > { %s3793_s17 = sld [smem:[#allocation42_spill]]  ;;  %s2686_s20 = scalar_lea.vmem %s3256_s30, 1024 }
  0x36   : > { %p2687_p2 = scmp.ne.s32.totalorder %s3256_s30, %s2686_s20  ;;  %p2694_p9 = scmp.lt.s32.totalorder %s3256_s30, %s3256_s30 }
  0x37   : > { %p2695_p10 = scmp.lt.s32.totalorder %s2686_s20, %s2686_s20 }
  0x38   : > { %p2689_p5 = pnand %p2687_p2, %p3262_p7 }
  0x39   : > { %p2696_p11 = por %p2695_p10, %p2694_p9 }
  0x3a   : > { %p2690_p8 = pneg %p2689_p5 }
  0x3b   : > { %2481 = dma.hbm_to_vmem [thread:$0]  (!%p3252_p6), %s3793_s17, 1024, %s561_s28, [#allocation6], %s3092_s3, %s3092_s3, %s3093_s4  }
  0x3c   : > { %p2697_p12 = pnand %p2696_p11, %p2690_p8 }
  0x3e   : > { %2700 = shalt.err (!%p2697_p12)
}
  0x3f   : > { %s3794_s17 = sld [smem:[#allocation44_spill]]  ;;  %s2712_s28 = scalar_lea.vmem %s3258_s23, 1024 }
  0x40   : > { %p2713_p13 = scmp.ne.s32.totalorder %s3258_s23, %s2712_s28  ;;  %p2720_p5 = scmp.lt.s32.totalorder %s3258_s23, %s3258_s23 }
  0x41   : > { %p2721_p8 = scmp.lt.s32.totalorder %s2712_s28, %s2712_s28 }
  0x42   : > { %p2715_p0 = pnand %p2713_p13, %p3262_p7 }
  0x43   : > { %p2722_p9 = por %p2721_p8, %p2720_p5 }
  0x44   : > { %p2716_p2 = pneg %p2715_p0 }
  0x45   : > { %2484 = dma.hbm_to_vmem [thread:$0]  (!%p3252_p6), %s3794_s17, 1024, %s3256_s30, [#allocation9], %s3092_s3, %s3092_s3, %s3093_s4  }
  0x46   : > { %p2723_p10 = pnand %p2722_p9, %p2716_p2 }
  0x48   : > { %2726 = shalt.err (!%p2723_p10)
}
  0x49   : > { %s3795_s8 = sld [smem:[#allocation47_spill]]  ;;  %s3094_s30 = smov [#allocation14]  }
  0x4a   : > { %s640_s24 = sshll.u32 %s3094_s30, 4  ;;  %s3095_s21 = smov [#allocation10]   ;;  %s641_s24 = int_to_ptr.vmem [resolvable:$true] %s640_s24 }
  0x4b   : > { %s592_s17 = sshll.u32 %s3095_s21, 4  ;;  %s2738_s28 = scalar_lea.vmem %s641_s24, 1024  ;;  %s593_s17 = int_to_ptr.vmem [resolvable:$true] %s592_s17 }
  0x4c   : > { %p2739_p11 = scmp.ne.s32.totalorder %s641_s24, %s2738_s28  ;;  %p2746_p0 = scmp.lt.s32.totalorder %s641_s24, %s641_s24 }
  0x4d   : > { %p2747_p2 = scmp.lt.s32.totalorder %s2738_s28, %s2738_s28 }
  0x4e   : > { %p2741_p12 = pnand %p2739_p11, %p3262_p7 }
  0x4f   : > { %2490 = dma.hbm_to_vmem [thread:$0]  (!%p3252_p6), %s3795_s8, 1024, %s3258_s23, [#allocation12], %s3092_s3, %s3092_s3, %s3093_s4  }
  0x50   : > { %p2742_p13 = pneg %p2741_p12  ;;  %p2748_p5 = por %p2747_p2, %p2746_p0 }
  0x52   : > { %p2749_p8 = pnand %p2748_p5, %p2742_p13 }
  0x54   : > { %2752 = shalt.err (!%p2749_p8)
}
  0x55   : > { %s3796_s12 = sld [smem:[#allocation49_spill]]  ;;  %s2764_s22 = scalar_lea.vmem %s593_s17, 1024 }
  0x56   : > { %p2765_p9 = scmp.ne.s32.totalorder %s593_s17, %s2764_s22  ;;  %p2772_p12 = scmp.lt.s32.totalorder %s593_s17, %s593_s17 }
  0x57   : > { %p2773_p0 = scmp.lt.s32.totalorder %s2764_s22, %s2764_s22 }
  0x58   : > { %p2767_p10 = pnand %p2765_p9, %p3262_p7 }
  0x59   : > { %p2774_p13 = por %p2773_p0, %p2772_p12 }
  0x5a   : > { %p2768_p11 = pneg %p2767_p10 }
  0x5b   : > { %2496 = dma.hbm_to_vmem [thread:$0]  (!%p3252_p6), %s3796_s12, 1024, %s641_s24, [#allocation15], %s3092_s3, %s3092_s3, %s3093_s4  }
  0x5c   : > { %p2775_p2 = pnand %p2774_p13, %p2768_p11 }
  0x5e   : > { %2778 = shalt.err (!%p2775_p2)
}
  0x5f   : > { %s3797_s6 = sld [smem:[#allocation46_spill]]  ;;  %s3096_s24 = smov [#allocation13]  }
  0x60   : > { %s624_s28 = sshll.u32 %s3096_s24, 4  ;;  %s3097_s23 = smov [#allocation16]   ;;  %s625_s28 = int_to_ptr.vmem [resolvable:$true] %s624_s28 }
  0x61   : > { %s656_s20 = sshll.u32 %s3097_s23, 4  ;;  %s2790_s8 = scalar_lea.vmem %s625_s28, 1024  ;;  %s657_s20 = int_to_ptr.vmem [resolvable:$true] %s656_s20 }
  0x62   : > { %p2791_p5 = scmp.ne.s32.totalorder %s625_s28, %s2790_s8  ;;  %p2798_p10 = scmp.lt.s32.totalorder %s625_s28, %s625_s28 }
  0x63   : > { %p2799_p11 = scmp.lt.s32.totalorder %s2790_s8, %s2790_s8 }
  0x64   : > { %p2793_p8 = pnand %p2791_p5, %p3262_p7 }
  0x65   : > { %2487 = dma.hbm_to_vmem [thread:$0]  (!%p3252_p6), %s3797_s6, 1024, %s593_s17, [#allocation9], %s3092_s3, %s3092_s3, %s3093_s4  }
  0x66   : > { %p2794_p9 = pneg %p2793_p8  ;;  %p2800_p12 = por %p2799_p11, %p2798_p10 }
  0x68   : > { %p2801_p0 = pnand %p2800_p12, %p2794_p9 }
  0x6a   : > { %2804 = shalt.err (!%p2801_p0)
}
  0x6b   : > { %s3798_s10 = sld [smem:[#allocation48_spill]]  ;;  %s2816_s30 = scalar_lea.vmem %s657_s20, 1024 }
  0x6c   : > { %p2817_p13 = scmp.ne.s32.totalorder %s657_s20, %s2816_s30  ;;  %p2824_p8 = scmp.lt.s32.totalorder %s657_s20, %s657_s20 }
  0x6d   : > { %p2825_p10 = scmp.lt.s32.totalorder %s2816_s30, %s2816_s30 }
  0x6e   : > { %p2819_p2 = pnand %p2817_p13, %p3262_p7 }
  0x6f   : > { %p2826_p9 = por %p2825_p10, %p2824_p8 }
  0x70   : > { %p2820_p5 = pneg %p2819_p2 }
  0x71   : > { %2493 = dma.hbm_to_vmem [thread:$0]  (!%p3252_p6), %s3798_s10, 1024, %s625_s28, [#allocation12], %s3092_s3, %s3092_s3, %s3093_s4  }
  0x72   : > { %p2827_p11 = pnand %p2826_p9, %p2820_p5 }
  0x74   : > { %2830 = shalt.err (!%p2827_p11)
}
  0x75   : > { %s3799_s14 = sld [smem:[#allocation50_spill]]  ;;  %s3098_s24 = smov [#allocation17]  }
  0x76   : > { %s672_s28 = sshll.u32 %s3098_s24, 4  ;;  %s673_s28 = int_to_ptr.vmem [resolvable:$true] %s672_s28 }
  0x77   : > { %s2842_s23 = scalar_lea.vmem %s673_s28, 1024  ;;  %p2850_p2 = scmp.lt.s32.totalorder %s673_s28, %s673_s28 }
  0x78   : > { %p2843_p12 = scmp.ne.s32.totalorder %s673_s28, %s2842_s23  ;;  %p2851_p5 = scmp.lt.s32.totalorder %s2842_s23, %s2842_s23 }
  0x7a   : > { %p2845_p0 = pnand %p2843_p12, %p3262_p7  ;;  %p2852_p8 = por %p2851_p5, %p2850_p2 }
  0x7b   : > { %2499 = dma.hbm_to_vmem [thread:$0]  (!%p3252_p6), %s3799_s14, 1024, %s657_s20, [#allocation15], %s3092_s3, %s3092_s3, %s3093_s4  }
  0x7c   : > { %p2846_p13 = pneg %p2845_p0 }
  0x7e   : > { %p2853_p10 = pnand %p2852_p8, %p2846_p13 }
  0x80   : > { %2856 = shalt.err (!%p2853_p10)
}
  0x81   : > { %s3800_s16 = sld [smem:[#allocation51_spill]]  ;;  %s3763_s5 = sadd.s32 4294967294, %s3087_s27  }
  0x82   : > { %s3358_s1 = sadd.s32 1, %s3087_s27   ;;  %s58_s30 = sadd.s32 1, %s3083_s26 }
  0x83   : > { %3801 = sst [smem:[#allocation37_spill]] %s3358_s1  ;;  %s55_s22 = ssub.s32 %s3087_s27, %s3358_s1 }
  0x84   : > { %p56_p7 = scmp.eq.s32.totalorder %s55_s22, 0  ;;  %p65_p9 = scmp.ne.s32.totalorder %s3083_s26, %s3079_s25 }
  0x85   : > { %p66_p11 = scmp.eq.s32.totalorder %s3087_s27, 0  ;;  %p71_p12 = scmp.ne.s32.totalorder %s3079_s25, %s3075_s2 }
  0x86   : > { %s3369_s8 = scalar_select %p56_p7, %s3083_s26, %s58_s30  }
  0x87   : > { %2502 = dma.hbm_to_vmem [thread:$0]  (!%p3252_p6), %s3800_s16, 1024, %s673_s28, [#allocation18], %s3092_s3, %s3092_s3, %s3093_s4  }
  0x88   : > { %3802 = sst [smem:[#allocation38_spill]] %s3369_s8  ;;  %p3371_p0 = por %p66_p11, %p65_p9 }
  0x89   : > { %p3377_p6 = por %p3769_p1, %p71_p12  ;;  %p457_p13 = scmp.eq.s32.totalorder %s3238_s29, 1 }
  0x8a   : > { %p463_p2 = scmp.eq.s32.totalorder %s3763_s5, 1  ;;  %p2531_p5 = scmp.lt.s32.totalorder %s3087_s27, 2 }
  0x8b   : > { %s3804_s3 = scalar_select %p3377_p6, 1, 0 }
  0x8c   : > { %s689_s4 = sand.u32 1, %s3083_s26   ;;  %p3386_p8 = por %p457_p13, %p65_p9 }
  0x8d   : > { %p3390_p10 = por %p463_p2, %p71_p12  ;;  %s3394_s23 = sshll.u32 %s689_s4, 3 }
  0x8e   : > { %s3805_s24 = scalar_select %p3386_p8, 1, 0 }
  0x8f   : > { %s3806_s28 = scalar_select %p3390_p10, 1, 0 }
  0x90   : > { %s2102_s17 = sshll.u32 %s3087_s27, 7  ;;  %s3808_s30 = sld [smem:[#allocation40_spill]] }
  0x91   : > { %3807 = sst [smem:[#allocation39_spill]] %s3806_s28  ;;  %s693_s5 = scalar_lea.vmem [#allocation2], %s3394_s23 }
  0x92   : > { %s700_s10 = sshll.u32 %s693_s5, 4  ;;  %p3407_p7 = pnand %p2531_p5, %p3371_p0  ;;  %s3403_s10 = int_to_ptr.vmem [resolvable:$true] %s700_s10 }
  0x93   : > { %s3810_s8 = sld [smem:[#allocation41_spill]]  ;;  %s707_s22 = sand.u32 1, %s3087_s27  }
  0x94   : > { %s690_s26 = scalar_lea.sflag [#allocation3], %s689_s4  ;;  %p2859_p11 = pneg %p3407_p7 }
  0x96   : > { %s3400_s6 = scalar_lea.hbm %s3808_s30, %s2102_s17  ;;  %s2862_s28 = scalar_lea.hbm %s3808_s30, 256 }
  0x97   : > { %s2857_s1 = scalar_lea.hbm %s3400_s6, 128  ;;  %p2863_p13 = scmp.lt.s32.totalorder %s3400_s6, %s3808_s30 }
  0x98   : > { %p2858_p9 = scmp.ne.s32.totalorder %s3400_s6, %s2857_s1  ;;  %p2864_p2 = scmp.lt.s32.totalorder %s2862_s28, %s2857_s1 }
  0x99   : > { %s3414_s20 = scalar_lea.hbm %s3810_s8, %s2102_s17 }
  0x9a   : > { %p2860_p12 = pnand %p2859_p11, %p2858_p9  ;;  %p2865_p5 = por %p2864_p2, %p2863_p13 }
  0x9c   : > { %p2861_p0 = pneg %p2860_p12 }
  0x9e   : > { %p2866_p4 = pnand %p2865_p5, %p2861_p0 }
  0xa0   : > { %2869 = shalt.err (!%p2866_p4)
}
  0xa1   : > { %s2870_s16 = scalar_lea.vmem %s3403_s10, 128  ;;  %s3099_s4 = smov [#allocation2]  }
  0xa2   : > { %p2871_p1 = scmp.ne.s32.totalorder %s3403_s10, %s2870_s16  ;;  %s2875_s17 = sshll.u32 %s3099_s4, 4  ;;  %s2876_s17 = int_to_ptr.vmem [resolvable:$false] %s2875_s17 }
  0xa3   : > { %s2877_s5 = scalar_lea.vmem %s2876_s17, 256  ;;  %p2878_p10 = scmp.lt.s32.totalorder %s3403_s10, %s2876_s17 }
  0xa4   : > { %p2873_p9 = pnand %p2871_p1, %p2859_p11  ;;  %p2879_p8 = scmp.lt.s32.totalorder %s2877_s5, %s2870_s16 }
  0xa6   : > { %p2874_p12 = pneg %p2873_p9  ;;  %p2880_p6 = por %p2879_p8, %p2878_p10 }
  0xa8   : > { %p2881_p13 = pnand %p2880_p6, %p2874_p12 }
  0xaa   : > { %2884 = shalt.err (!%p2881_p13)
}
  0xab   : > { %2506 = dma.hbm_to_vmem [thread:$0]  (!%p3407_p7), %s3400_s6, 128, %s3403_s10, %s690_s26  }
  0xac   : > { %s711_s2 = scalar_lea.vmem [#allocation5], %s3394_s23  ;;  %s708_s28 = scalar_lea.sflag [#allocation6], %s707_s22 }
  0xad   : > { %s718_s1 = sshll.u32 %s711_s2, 4  ;;  %s2885_s21 = scalar_lea.hbm %s3414_s20, 128  ;;  %s719_s1 = int_to_ptr.vmem [resolvable:$true] %s718_s1 }
  0xae   : > { %p2886_p1 = scmp.ne.s32.totalorder %s3414_s20, %s2885_s21  ;;  %s2890_s4 = scalar_lea.hbm %s3810_s8, 256 }
  0xaf   : > { %p2891_p8 = scmp.lt.s32.totalorder %s3414_s20, %s3810_s8  ;;  %p2892_p10 = scmp.lt.s32.totalorder %s2890_s4, %s2885_s21 }
  0xb0   : > { %p2888_p4 = pnand %p2886_p1, %p2859_p11 }
  0xb1   : > { %p2893_p0 = por %p2892_p10, %p2891_p8 }
  0xb2   : > { %p2889_p6 = pneg %p2888_p4 }
  0xb4   : > { %p2894_p2 = pnand %p2893_p0, %p2889_p6 }
  0xb6   : > { %2897 = shalt.err (!%p2894_p2)
}
  0xb7   : > { %s2898_s6 = scalar_lea.vmem %s719_s1, 128  ;;  %s3100_s10 = smov [#allocation5]  }
  0xb8   : > { %p2899_p5 = scmp.ne.s32.totalorder %s719_s1, %s2898_s6  ;;  %s2903_s26 = sshll.u32 %s3100_s10, 4  ;;  %s2904_s26 = int_to_ptr.vmem [resolvable:$false] %s2903_s26 }
  0xb9   : > { %s2905_s23 = scalar_lea.vmem %s2904_s26, 256  ;;  %p2906_p13 = scmp.lt.s32.totalorder %s719_s1, %s2904_s26 }
  0xba   : > { %p2901_p9 = pnand %p2899_p5, %p2859_p11  ;;  %p2907_p1 = scmp.lt.s32.totalorder %s2905_s23, %s2898_s6 }
  0xbc   : > { %p2902_p12 = pneg %p2901_p9  ;;  %p2908_p4 = por %p2907_p1, %p2906_p13 }
  0xbe   : > { %p2909_p3 = pnand %p2908_p4, %p2902_p12 }
  0xc0   : > { %2912 = shalt.err (!%p2909_p3)
}
  0xc1   : > { %2509 = dma.hbm_to_vmem [thread:$0]  (!%p3407_p7), %s3414_s20, 128, %s719_s1, %s708_s28  }
  0xc2   : > { %p3811_p6 = scmp.ne.s32.totalorder %s3790_s0, 0 }
  0xc3   : > { %s3465_s22 = sand.u32 (!%p3811_p6), 1, %s3079_s25   ;;  %p3812_p11 = scmp.ne.s32.totalorder (!%p3811_p6), %s3804_s3, 0 }
  0xc4   : > { %727 = sbr.rel (%p3811_p6) target bundleno = 1090 (0x442), region = 92  ;;  %s3468_s2 = sshll.u32 (!%p3811_p6), %s3465_s22, 3 }
  0xc5   : > { %s730_s21 = scalar_lea.sflag (!%p3811_p6), [#allocation3], %s3465_s22  ;;  %s733_s14 = scalar_lea.vmem (!%p3811_p6), [#allocation2], %s3468_s2 }
  0xc9   : > { %3034 = dma.done.wait (%p3812_p11), %s730_s21, 128  }
  0xca   : > { %3036 = vsyncadd (%p3812_p11), %s730_s21, 4294967168  ;;  %s738_s12 = sand.u32 1, %s3238_s29   ;;  %s742_s20 = scalar_lea.vmem [#allocation5], %s3468_s2 }
  0xcb   : > { %s739_s0 = scalar_lea.sflag [#allocation6], %s738_s12 }
  0xcc   : > { %3038 = dma.done.wait (%p3812_p11), %s739_s0, 128  }
  0xcd   : > { %3040 = vsyncadd (%p3812_p11), %s739_s0, 4294967168  ;;  %p3813_p3 = scmp.eq.s32.totalorder %s3238_s29, 0 }
  0xcf   : > { %3042 = dma.done.wait (%p3813_p3), [#allocation6], 1024   ;;  %p3814_p7 = pmov %p3813_p3 }
  0xd0   : > { %p3815_p8 = pmov %p3813_p3 }
  0xd1   : > { %3044 = vsyncadd (%p3814_p7), [#allocation6], 4294966272 }
  0xd2   : > { %3046 = dma.done.wait (%p3815_p8), [#allocation9], 2048   ;;  %p3816_p10 = pmov %p3813_p3 }
  0xd3   : > { %p3817_p0 = pmov %p3813_p3 }
  0xd4   : > { %3048 = vsyncadd (%p3816_p10), [#allocation9], 4294965248 }
  0xd5   : > { %3050 = dma.done.wait (%p3817_p0), [#allocation12], 2048   ;;  %p3818_p2 = pmov %p3817_p0 }
  0xd6   : > { %p3819_p5 = pmov %p3817_p0 }
  0xd7   : > { %3052 = vsyncadd (%p3818_p2), [#allocation12], 4294965248 }
  0xd8   : > { %3054 = dma.done.wait (%p3819_p5), [#allocation15], 2048   ;;  %p3820_p9 = pmov %p3817_p0 }
  0xd9   : > { %p3821_p12 = pmov %p3817_p0 }
  0xda   : > { %3056 = vsyncadd (%p3820_p9), [#allocation15], 4294965248 }
  0xdb   : > { %3058 = dma.done.wait (%p3821_p12), [#allocation18], 1024   ;;  %p3822_p13 = pmov %p3817_p0 }
  0xdc   : > { %v3101_v0 = vmov 0.0   ;;  %vm3102_vm0 = vmmov 0   ;;  %v2585_v1 = vld [vmem:[#allocation7 + $0x38] sm:$0xff]   ;;  %v2586_v2 = vld [vmem:[#allocation7 + $0x30] sm:$0xff]   ;;  %v2587_v3 = vld [vmem:[#allocation7 + $0x28] sm:$0xff]   ;;  %s3823_s28 = sld [smem:[#allocation43_spill]] }
  0xdd   : > { %3060 = vsyncadd (%p3822_p13), [#allocation18], 4294966272  ;;  %2274 = vmatprep.subr.bf16.mxu0 %v3101_v0  ;;  %2290 = vmatprep.mubr.msk.bf16.mxu0 %vm3102_vm0, %v3101_v0  ;;  %v2588_v4 = vld [vmem:[#allocation7 + $0x20] sm:$0xff]   ;;  %v2589_v5 = vld [vmem:[#allocation7 + $0x18] sm:$0xff]   ;;  %s3824_s6 = sld [smem:[#allocation45_spill]]  ;;  %s831_s10 = scalar_lea.vmem [#allocation19], %s3468_s2 }
  0xde   : > { %2294 = vmatprep.subr.bf16.mxu1 %v3101_v0  ;;  %2310 = vmatprep.mubr.msk.bf16.mxu1 %vm3102_vm0, %v3101_v0  ;;  %v2601_v6 = vld [vmem:[#allocation8 + $0x38] sm:$0xff]   ;;  %v2590_v7 = vld [vmem:[#allocation7 + $0x10] sm:$0xff]   ;;  %v2591_v9 = vld [vmem:[#allocation7 + $0x8] sm:$0xff]   ;;  %s838_s21 = scalar_lea.vmem [#allocation20], %s3468_s2  ;;  %s3613_s1 = sshll.u32 %s3238_s29, 7 }
  0xdf   : > { %2275 = vmatpush3.bf16.msra.mxu0 %v2585_v1  ;;  %2295 = vmatpush3.bf16.msra.mxu1 %v2601_v6  ;;  %v2602_v8 = vld [vmem:[#allocation8 + $0x30] sm:$0xff]   ;;  %v2603_v10 = vld [vmem:[#allocation8 + $0x28] sm:$0xff]   ;;  %v2592_v11 = vld [vmem:[#allocation7] sm:$0xff]   ;;  %s1800_s17 = scalar_lea.hbm %s3756_s19, %s3613_s1  ;;  %s3623_s5 = scalar_lea.sflag [#allocation21], %s738_s12 }
  0xe0   : > { %2276 = vmatprep.subr.bf16.mxu0 %v3101_v0  ;;  %2296 = vmatprep.subr.bf16.mxu1 %v3101_v0  ;;  %v854_v12 = vld [vmem:[%s733_s14] sm:$0xff]  ;;  %v2593_v14 = vld [vmem:[#allocation10 + $0x38] sm:$0xff]   ;;  %v2594_v17 = vld [vmem:[#allocation10 + $0x30] sm:$0xff]   ;;  %p3825_p4 = scmp.ne.s32.totalorder %s3805_s24, 0  ;;  %s3103_s26 = smov [#allocation20]  }
  0xe1   : > { %v2604_v13 = vld [vmem:[#allocation8 + $0x20] sm:$0xff]   ;;  %v855_v15 = vpack.c.bf16 %v854_v12, %v854_v12  ;;  %v2605_v16 = vld [vmem:[#allocation8 + $0x18] sm:$0xff]   ;;  %v2606_v18 = vld [vmem:[#allocation8 + $0x10] sm:$0xff]   ;;  %s2917_s23 = sshll.u32 %s3103_s26, 4  ;;  %s2918_s23 = int_to_ptr.vmem [resolvable:$false] %s2917_s23 }
  0xe2   : > { %v2595_v19 = vld [vmem:[#allocation10 + $0x28] sm:$0xff]   ;;  %v2596_v20 = vld [vmem:[#allocation10 + $0x20] sm:$0xff]   ;;  %v2597_v21 = vld [vmem:[#allocation10 + $0x18] sm:$0xff]   ;;  %s2919_s14 = scalar_lea.vmem %s2918_s23, 256 }
  0xe3   : > { %2277 = vmatpush3.bf16.msra.mxu0 %v2586_v2  ;;  %2297 = vmatpush3.bf16.msra.mxu1 %v2602_v8  ;;  %v2598_v22 = vld [vmem:[#allocation10 + $0x10] sm:$0xff]   ;;  %v2599_v23 = vld [vmem:[#allocation10 + $0x8] sm:$0xff]   ;;  %v2600_v24 = vld [vmem:[#allocation10] sm:$0xff]  }
  0xe4   : > { %2278 = vmatprep.subr.bf16.mxu0 %v3101_v0  ;;  %2298 = vmatprep.subr.bf16.mxu1 %v3101_v0  ;;  %v856_v25 = vld [vmem:[%s742_s20] sm:$0xff]  ;;  %v2607_v27 = vld [vmem:[#allocation8 + $0x8] sm:$0xff]   ;;  %v2608_v28 = vld [vmem:[#allocation8] sm:$0xff]  }
  0xe5   : > { %v857_v26 = vpack.c.bf16 %v856_v25, %v856_v25  ;;  %v2617_v29 = vld [vmem:[#allocation13 + $0x38] sm:$0xff]   ;;  %v2618_v30 = vld [vmem:[#allocation13 + $0x30] sm:$0xff]   ;;  %v2619_v31 = vld [vmem:[#allocation13 + $0x28] sm:$0xff]  }
  0xe6   : > { %v2620_v32 = vld [vmem:[#allocation13 + $0x20] sm:$0xff]   ;;  %v2621_v33 = vld [vmem:[#allocation13 + $0x18] sm:$0xff]   ;;  %v2622_v34 = vld [vmem:[#allocation13 + $0x10] sm:$0xff]  }
  0xe7   : > { %2279 = vmatpush3.bf16.msra.mxu0 %v2587_v3  ;;  %2299 = vmatpush3.bf16.msra.mxu1 %v2603_v10  ;;  %v2623_v35 = vld [vmem:[#allocation13 + $0x8] sm:$0xff]   ;;  %v2120_v36 = vld [vmem:[%s3823_s28] ss:$0 sm:$0xff]  ;;  %v2609_v42 = vld [vmem:[#allocation11 + $0x38] sm:$0xff]   ;;  %s1802_s28 = sshll.u32 %s838_s21, 4  ;;  %s1803_s28 = int_to_ptr.vmem [resolvable:$true] %s1802_s28 }
  0xe8   : > { %2280 = vmatprep.subr.bf16.mxu0 %v3101_v0  ;;  %2300 = vmatprep.subr.bf16.mxu1 %v3101_v0  ;;  %v2610_v45 = vld [vmem:[#allocation11 + $0x30] sm:$0xff]   ;;  %v2611_v46 = vld [vmem:[#allocation11 + $0x28] sm:$0xff]   ;;  %v2612_v47 = vld [vmem:[#allocation11 + $0x20] sm:$0xff]   ;;  %p2920_p3 = scmp.lt.s32.totalorder %s1803_s28, %s2918_s23 }
  0xe9   : > { %v2613_v48 = vld [vmem:[#allocation11 + $0x18] sm:$0xff]   ;;  %v2614_v49 = vld [vmem:[#allocation11 + $0x10] sm:$0xff]   ;;  %v2615_v50 = vld [vmem:[#allocation11 + $0x8] sm:$0xff]  }
  0xea   : > { %v2138_v51 = vld [vmem:[%s3744_s7] ss:$0 sm:$0xff]  ;;  %v2633_v61 = vld [vmem:[#allocation14 + $0x38] sm:$0xff]   ;;  %v2634_v62 = vld [vmem:[#allocation14 + $0x30] sm:$0xff]  }
  0xeb   : > { %2281 = vmatpush3.bf16.msra.mxu0 %v2588_v4  ;;  %2301 = vmatpush3.bf16.msra.mxu1 %v2604_v13  ;;  %v2616_v53 = vld [vmem:[#allocation11] sm:$0xff]   ;;  %v2635_v63 = vld [vmem:[#allocation14 + $0x28] sm:$0xff]   ;;  %v2637_v2 = vld [vmem:[#allocation14 + $0x18] sm:$0xff]  }
  0xec   : > { %2282 = vmatprep.subr.bf16.mxu0 %v3101_v0  ;;  %2302 = vmatprep.subr.bf16.mxu1 %v3101_v0  ;;  %v2624_v60 = vld [vmem:[#allocation13] sm:$0xff]   ;;  %v2638_v3 = vld [vmem:[#allocation14 + $0x10] sm:$0xff]   ;;  %v2625_v8 = vld [vmem:[#allocation16 + $0x38] sm:$0xff]  }
  0xed   : > { %v2636_v1 = vld [vmem:[#allocation14 + $0x20] sm:$0xff]   ;;  %v2626_v12 = vld [vmem:[#allocation16 + $0x30] sm:$0xff]   ;;  %v2627_v13 = vld [vmem:[#allocation16 + $0x28] sm:$0xff]  }
  0xee   : > { %v2129_v4 = vld [vmem:[%s3824_s6] ss:$0 sm:$0xff]  ;;  %s2913_s6 = scalar_lea.vmem %s1803_s28, 128 }
  0xef   : > { %2283 = vmatpush3.bf16.msra.mxu0 %v2589_v5  ;;  %2303 = vmatpush3.bf16.msra.mxu1 %v2605_v16  ;;  %v2630_v16 = vld [vmem:[#allocation16 + $0x10] sm:$0xff]   ;;  %p2914_p1 = scmp.ne.s32.totalorder %s1803_s28, %s2913_s6  ;;  %p2921_p7 = scmp.lt.s32.totalorder %s2919_s14, %s2913_s6 }
  0xf0   : > { %2284 = vmatprep.subr.bf16.mxu0 %v3101_v0  ;;  %2304 = vmatprep.subr.bf16.mxu1 %v3101_v0 }
  0xf1   : > { %p2915_p6 = pnand %p2914_p1, %p3825_p4  ;;  %p2922_p8 = por %p2921_p7, %p2920_p3 }
  0xf3   : > { %2285 = vmatpush3.bf16.msra.mxu0 %v2590_v7  ;;  %2305 = vmatpush3.bf16.msra.mxu1 %v2606_v18  ;;  %v2147_v18 = vld [vmem:[%s3746_s9] ss:$0 sm:$0xff]  ;;  %p2916_p11 = pneg %p2915_p6 }
  0xf4   : > { %2286 = vmatprep.subr.bf16.mxu0 %v3101_v0  ;;  %2306 = vmatprep.subr.bf16.mxu1 %v3101_v0 }
  0xf5   : > { %p2923_p10 = pnand %p2922_p8, %p2916_p11 }
  0xf7   : > { %2287 = vmatpush3.bf16.msra.mxu0 %v2591_v9  ;;  %2307 = vmatpush3.bf16.msra.mxu1 %v2607_v27  ;;  %v2640_v27 = vld [vmem:[#allocation14] sm:$0xff]  }
  0xf8   : > { %2288 = vmatprep.subr.bf16.mxu0 %v3101_v0  ;;  %2308 = vmatprep.subr.bf16.mxu1 %v3101_v0 }
  0xfb   : > { %2289 = vmatpush3.bf16.msra.mxu0 %v2592_v11  ;;  %2309 = vmatpush3.bf16.msra.mxu1 %v2608_v28  ;;  %v2156_v28 = vld [vmem:[%s3748_s11] ss:$0 sm:$0xff] }
  0xfc   : > { %2314 = vmatprep.subr.bf16.mxu0 %v3101_v0  ;;  %2334 = vmatprep.subr.bf16.mxu1 %v3101_v0 }
  0xfe   : > { %2291 = vmatmul.mubr.bf16.vlgmr.msra.gmra.mxu0 %v855_v15  ;;  %v2629_v15 = vld [vmem:[#allocation16 + $0x18] sm:$0xff]  }
  0xff   : > { %2315 = vmatpush3.bf16.msra.mxu0 %v2593_v14  ;;  %2330 = vmatprep.mubr.msk.bf16.mxu0 %vm3102_vm0, %v3101_v0  ;;  %v2628_v14 = vld [vmem:[#allocation16 + $0x20] sm:$0xff]  }
 0x100   : > { %2316 = vmatprep.subr.bf16.mxu0 %v3101_v0 }
 0x103   : > { %2317 = vmatpush3.bf16.msra.mxu0 %v2594_v17  ;;  %v2631_v17 = vld [vmem:[#allocation16 + $0x8] sm:$0xff]  }
 0x104   : > { %2318 = vmatprep.subr.bf16.mxu0 %v3101_v0 }
 0x107   : > { %2319 = vmatpush3.bf16.msra.mxu0 %v2595_v19  ;;  %v2632_v19 = vld [vmem:[#allocation16] sm:$0xff]  }
 0x108   : > { %2320 = vmatprep.subr.bf16.mxu0 %v3101_v0 }
 0x10b   : > { %2321 = vmatpush3.bf16.msra.mxu0 %v2596_v20 }
 0x10c   : > { %2322 = vmatprep.subr.bf16.mxu0 %v3101_v0 }
 0x10f   : > { %2323 = vmatpush3.bf16.msra.mxu0 %v2597_v21 }
 0x110   : > { %2324 = vmatprep.subr.bf16.mxu0 %v3101_v0 }
 0x113   : > { %2325 = vmatpush3.bf16.msra.mxu0 %v2598_v22 }
 0x114   : > { %2326 = vmatprep.subr.bf16.mxu0 %v3101_v0 }
 0x117   : > { %2327 = vmatpush3.bf16.msra.mxu0 %v2599_v23 }
 0x118   : > { %2328 = vmatprep.subr.bf16.mxu0 %v3101_v0 }
 0x11b   : > { %2329 = vmatpush3.bf16.msra.mxu0 %v2600_v24 }
 0x11c   : > { %2354 = vmatprep.subr.bf16.mxu0 %v3101_v0 }
 0x11e   : > { %2331 = vmatmul.mubr.bf16.vlgmr.msra.gmra.mxu0 %v857_v26  ;;  %v2639_v26 = vld [vmem:[#allocation14 + $0x8] sm:$0xff]  }
 0x11f   : > { %2370 = vmatprep.mubr.msk.bf16.mxu0 %vm3102_vm0, %v3101_v0  ;;  %2355 = vmatpush3.bf16.msra.mxu0 %v2617_v29 }
 0x120   : > { %2356 = vmatprep.subr.bf16.mxu0 %v3101_v0 }
 0x123   : > { %2357 = vmatpush3.bf16.msra.mxu0 %v2618_v30 }
 0x124   : > { %2358 = vmatprep.subr.bf16.mxu0 %v3101_v0 }
 0x127   : > { %2359 = vmatpush3.bf16.msra.mxu0 %v2619_v31 }
 0x128   : > { %2360 = vmatprep.subr.bf16.mxu0 %v3101_v0 }
 0x12b   : > { %2361 = vmatpush3.bf16.msra.mxu0 %v2620_v32 }
 0x12c   : > { %2362 = vmatprep.subr.bf16.mxu0 %v3101_v0 }
 0x12f   : > { %2363 = vmatpush3.bf16.msra.mxu0 %v2621_v33 }
 0x130   : > { %2364 = vmatprep.subr.bf16.mxu0 %v3101_v0 }
 0x133   : > { %2365 = vmatpush3.bf16.msra.mxu0 %v2622_v34  ;;  %v2641_v34 = vld [vmem:[#allocation17 + $0x38] sm:$0xff]  }
 0x134   : > { %2366 = vmatprep.subr.bf16.mxu0 %v3101_v0 }
 0x137   : > { %2367 = vmatpush3.bf16.msra.mxu0 %v2623_v35 }
 0x138   : > { %2368 = vmatprep.subr.bf16.mxu0 %v3101_v0 }
 0x13b   : > { %2369 = vmatpush3.bf16.msra.mxu0 %v2624_v60 }
 0x13c   : > { %2394 = vmatprep.subr.bf16.mxu0 %v3101_v0 }
 0x1be   : > { %v963_v37 = vpop.f32.mrf.mxu0 }
 0x1bf   : > { %v964_v38 = vadd.f32 %v2120_v36, %v963_v37  ;;  %v2642_v37 = vld [vmem:[#allocation17 + $0x30] sm:$0xff]  }
 0x1c0   : > { %v2292_v39 = vpop.f32.mrf.mxu0 }
 0x1c1   : > { %v969_v40 = vmax.f32 %v964_v38, 0.0  ;;  %v2643_v38 = vld [vmem:[#allocation17 + $0x28] sm:$0xff]   ;;  %v2644_v39 = vld [vmem:[#allocation17 + $0x20] sm:$0xff]  }
 0x1c2   : > { %v966_v41 = vpop.f32.mrf.mxu0 }
 0x1c3   : > { %v970_v43 = vpack.c.bf16 %v969_v40, %v969_v40  ;;  %v2645_v40 = vld [vmem:[#allocation17 + $0x18] sm:$0xff]   ;;  %v2646_v41 = vld [vmem:[#allocation17 + $0x10] sm:$0xff]  }
 0x1c4   : > { %v2293_v44 = vpop.f32.mrf.mxu0 }
 0x1c5   : > { %2311 = vmatmul.mubr.bf16.vlgmr.msra.gmra.mxu1 %v970_v43  ;;  %v2174_v43 = vld [vmem:[%s3752_s15] ss:$0 sm:$0xff] }
 0x1c6   : > { %2335 = vmatpush3.bf16.msra.mxu1 %v2609_v42  ;;  %2350 = vmatprep.mubr.msk.bf16.mxu1 %vm3102_vm0, %v3101_v0  ;;  %v2647_v42 = vld [vmem:[#allocation17 + $0x8] sm:$0xff]  }
 0x1c7   : > { %2336 = vmatprep.subr.bf16.mxu1 %v3101_v0 }
 0x1ca   : > { %2337 = vmatpush3.bf16.msra.mxu1 %v2610_v45  ;;  %v2648_v45 = vld [vmem:[#allocation17] sm:$0xff]  }
 0x1cb   : > { %2338 = vmatprep.subr.bf16.mxu1 %v3101_v0 }
 0x1ce   : > { %2339 = vmatpush3.bf16.msra.mxu1 %v2611_v46 }
 0x1cf   : > { %2340 = vmatprep.subr.bf16.mxu1 %v3101_v0 }
 0x1d2   : > { %2341 = vmatpush3.bf16.msra.mxu1 %v2612_v47 }
 0x1d3   : > { %2342 = vmatprep.subr.bf16.mxu1 %v3101_v0 }
 0x1d6   : > { %2343 = vmatpush3.bf16.msra.mxu1 %v2613_v48 }
 0x1d7   : > { %2344 = vmatprep.subr.bf16.mxu1 %v3101_v0 }
 0x1da   : > { %2345 = vmatpush3.bf16.msra.mxu1 %v2614_v49 }
 0x1db   : > { %2346 = vmatprep.subr.bf16.mxu1 %v3101_v0 }
 0x1de   : > { %v1187_v52 = vpop.f32.mrf.mxu0  ;;  %2347 = vmatpush3.bf16.msra.mxu1 %v2615_v50 }
 0x1df   : > { %v1188_v54 = vadd.f32 %v2138_v51, %v1187_v52  ;;  %2348 = vmatprep.subr.bf16.mxu1 %v3101_v0 }
 0x1e0   : > { %v2332_v55 = vpop.f32.mrf.mxu0 }
 0x1e1   : > { %v1193_v56 = vmax.f32 %v1188_v54, 0.0 }
 0x1e2   : > { %v1190_v57 = vpop.f32.mrf.mxu0  ;;  %2349 = vmatpush3.bf16.msra.mxu1 %v2616_v53 }
 0x1e3   : > { %v1194_v58 = vpack.c.bf16 %v1193_v56, %v1193_v56  ;;  %2374 = vmatprep.subr.bf16.mxu1 %v3101_v0 }
 0x1e4   : > { %v2333_v59 = vpop.f32.mrf.mxu0 }
 0x1e5   : > { %2351 = vmatmul.mubr.bf16.vlgmr.msra.gmra.mxu1 %v1194_v58 }
 0x1e6   : > { %2390 = vmatprep.mubr.msk.bf16.mxu1 %vm3102_vm0, %v3101_v0  ;;  %2375 = vmatpush3.bf16.msra.mxu1 %v2633_v61 }
 0x1e7   : > { %2376 = vmatprep.subr.bf16.mxu1 %v3101_v0 }
 0x1ea   : > { %2377 = vmatpush3.bf16.msra.mxu1 %v2634_v62 }
 0x1eb   : > { %2378 = vmatprep.subr.bf16.mxu1 %v3101_v0 }
 0x1ee   : > { %2379 = vmatpush3.bf16.msra.mxu1 %v2635_v63 }
 0x1ef   : > { %2380 = vmatprep.subr.bf16.mxu1 %v3101_v0 }
 0x1f2   : > { %2381 = vmatpush3.bf16.msra.mxu1 %v2636_v1 }
 0x1f3   : > { %2382 = vmatprep.subr.bf16.mxu1 %v3101_v0 }
 0x1f6   : > { %2383 = vmatpush3.bf16.msra.mxu1 %v2637_v2 }
 0x1f7   : > { %2384 = vmatprep.subr.bf16.mxu1 %v3101_v0 }
 0x1fa   : > { %2385 = vmatpush3.bf16.msra.mxu1 %v2638_v3 }
 0x1fb   : > { %2386 = vmatprep.subr.bf16.mxu1 %v3101_v0 }
 0x1fe   : > { %2387 = vmatpush3.bf16.msra.mxu1 %v2639_v26 }
 0x1ff   : > { %2388 = vmatprep.subr.bf16.mxu1 %v3101_v0 }
 0x202   : > { %2389 = vmatpush3.bf16.msra.mxu1 %v2640_v27 }
 0x203   : > { %2414 = vmatprep.subr.bf16.mxu1 %v3101_v0 }
 0x285   : > { %v1076_v5 = vpop.f32.mrf.mxu1 }
 0x286   : > { %v1077_v6 = vadd.f32 %v2129_v4, %v1076_v5 }
 0x287   : > { %v2312_v7 = vpop.f32.mrf.mxu1 }
 0x288   : > { %1306 = vst [vmem:[%s831_s10] sm:$0xff] %v1077_v6  ;;  %v1308_v9 = vpack.c.bf16 %v1077_v6, %v1077_v6 }
 0x289   : > { %v1079_v10 = vpop.f32.mrf.mxu1 }
 0x28a   : > { %2371 = vmatmul.mubr.bf16.vlgmr.msra.gmra.mxu0 %v1308_v9 }
 0x28b   : > { %v2313_v11 = vpop.f32.mrf.mxu1  ;;  %2395 = vmatpush3.bf16.msra.mxu0 %v2625_v8  ;;  %2410 = vmatprep.mubr.msk.bf16.mxu0 %vm3102_vm0, %v3101_v0 }
 0x28c   : > { %2396 = vmatprep.subr.bf16.mxu0 %v3101_v0 }
 0x28f   : > { %2397 = vmatpush3.bf16.msra.mxu0 %v2626_v12 }
 0x290   : > { %2398 = vmatprep.subr.bf16.mxu0 %v3101_v0 }
 0x293   : > { %2399 = vmatpush3.bf16.msra.mxu0 %v2627_v13 }
 0x294   : > { %2400 = vmatprep.subr.bf16.mxu0 %v3101_v0 }
 0x297   : > { %2401 = vmatpush3.bf16.msra.mxu0 %v2628_v14 }
 0x298   : > { %2402 = vmatprep.subr.bf16.mxu0 %v3101_v0 }
 0x29b   : > { %2403 = vmatpush3.bf16.msra.mxu0 %v2629_v15 }
 0x29c   : > { %2404 = vmatprep.subr.bf16.mxu0 %v3101_v0 }
 0x29f   : > { %2405 = vmatpush3.bf16.msra.mxu0 %v2630_v16 }
 0x2a0   : > { %2406 = vmatprep.subr.bf16.mxu0 %v3101_v0 }
 0x2a3   : > { %2407 = vmatpush3.bf16.msra.mxu0 %v2631_v17 }
 0x2a4   : > { %2408 = vmatprep.subr.bf16.mxu0 %v3101_v0 }
 0x2a5   : > { %v1300_v20 = vpop.f32.mrf.mxu1 }
 0x2a6   : > { %v1301_v21 = vadd.f32 %v2147_v18, %v1300_v20 }
 0x2a7   : > { %v2352_v22 = vpop.f32.mrf.mxu1  ;;  %2409 = vmatpush3.bf16.msra.mxu0 %v2632_v19 }
 0x2a8   : > { %1307 = vst [vmem:[%s838_s21] sm:$0xff] %v1301_v21  ;;  %v1533_v23 = vpack.c.bf16 %v1301_v21, %v1301_v21 }
 0x2a9   : > { %v1303_v24 = vpop.f32.mrf.mxu1 }
 0x2aa   : > { %2411 = vmatmul.mubr.bf16.vlgmr.msra.gmra.mxu0 %v1533_v23 }
 0x2ab   : > { %v2353_v25 = vpop.f32.mrf.mxu1 }
 0x34a   : > { %v1414_v29 = vpop.f32.mrf.mxu0 }
 0x34b   : > { %v1415_v30 = vadd.f32 %v2156_v28, %v1414_v29 }
 0x34c   : > { %v2372_v31 = vpop.f32.mrf.mxu0 }
 0x34d   : > { %v1420_v32 = vmax.f32 %v1415_v30, 0.0 }
 0x34e   : > { %v1417_v33 = vpop.f32.mrf.mxu0 }
 0x34f   : > { %v1421_v35 = vpack.c.bf16 %v1420_v32, %v1420_v32 }
 0x350   : > { %v2373_v36 = vpop.f32.mrf.mxu0 }
 0x351   : > { %2391 = vmatmul.mubr.bf16.vlgmr.msra.gmra.mxu1 %v1421_v35 }
 0x352   : > { %2415 = vmatpush3.bf16.msra.mxu1 %v2641_v34  ;;  %2430 = vmatprep.mubr.msk.bf16.mxu1 %vm3102_vm0, %v3101_v0 }
 0x353   : > { %2416 = vmatprep.subr.bf16.mxu1 %v3101_v0 }
 0x356   : > { %2417 = vmatpush3.bf16.msra.mxu1 %v2642_v37 }
 0x357   : > { %2418 = vmatprep.subr.bf16.mxu1 %v3101_v0 }
 0x35a   : > { %2419 = vmatpush3.bf16.msra.mxu1 %v2643_v38 }
 0x35b   : > { %2420 = vmatprep.subr.bf16.mxu1 %v3101_v0 }
 0x35e   : > { %2421 = vmatpush3.bf16.msra.mxu1 %v2644_v39 }
 0x35f   : > { %2422 = vmatprep.subr.bf16.mxu1 %v3101_v0 }
 0x362   : > { %2423 = vmatpush3.bf16.msra.mxu1 %v2645_v40 }
 0x363   : > { %2424 = vmatprep.subr.bf16.mxu1 %v3101_v0 }
 0x366   : > { %2425 = vmatpush3.bf16.msra.mxu1 %v2646_v41 }
 0x367   : > { %2426 = vmatprep.subr.bf16.mxu1 %v3101_v0 }
 0x36a   : > { %v1639_v44 = vpop.f32.mrf.mxu0  ;;  %2427 = vmatpush3.bf16.msra.mxu1 %v2647_v42 }
 0x36b   : > { %v1640_v46 = vadd.f32 %v2174_v43, %v1639_v44  ;;  %2428 = vmatprep.subr.bf16.mxu1 %v3101_v0 }
 0x36c   : > { %v2412_v47 = vpop.f32.mrf.mxu0 }
 0x36d   : > { %v1645_v48 = vmax.f32 %v1640_v46, 0.0 }
 0x36e   : > { %v1642_v49 = vpop.f32.mrf.mxu0  ;;  %2429 = vmatpush3.bf16.msra.mxu1 %v2648_v45 }
 0x36f   : > { %v1646_v50 = vpack.c.bf16 %v1645_v48, %v1645_v48 }
 0x370   : > { %v2413_v51 = vpop.f32.mrf.mxu0 }
 0x371   : > { %2431 = vmatmul.mubr.bf16.vlgmr.msra.gmra.mxu1 %v1646_v50 }
 0x372   : > { %2926 = shalt.err (!%p2923_p10)
}
 0x373   : > { %s2927_s21 = scalar_lea.hbm %s1800_s17, 128  ;;  %s2931_s0 = scalar_lea.hbm %s3756_s19, 256 }
 0x374   : > { %p2928_p0 = scmp.ne.s32.totalorder %s1800_s17, %s2927_s21  ;;  %p2932_p9 = scmp.lt.s32.totalorder %s1800_s17, %s3756_s19 }
 0x375   : > { %p2933_p12 = scmp.lt.s32.totalorder %s2931_s0, %s2927_s21 }
 0x376   : > { %p2929_p2 = pnand %p2928_p0, %p3825_p4 }
 0x377   : > { %p2934_p13 = por %p2933_p12, %p2932_p9 }
 0x378   : > { %p2930_p5 = pneg %p2929_p2 }
 0x37a   : > { %p2935_p1 = pnand %p2934_p13, %p2930_p5 }
 0x37c   : > { %2938 = shalt.err (!%p2935_p1)
}
 0x37d   : > { %2471 = dma.vmem_to_hbm [thread:$0]  (%p3825_p4), %s1803_s28, 128, %s1800_s17, %s3623_s5  }
 0x37e   : > { %s1787_s6 = scalar_lea.hbm %s3755_s18, %s3613_s1  ;;  %s1789_s26 = sshll.u32 %s831_s10, 4  ;;  %s1790_s26 = int_to_ptr.vmem [resolvable:$true] %s1789_s26 }
 0x37f   : > { %s1761_s23 = scalar_lea.sflag [#allocation4], %s3465_s22  ;;  %s2939_s14 = scalar_lea.vmem %s1790_s26, 128 }
 0x380   : > { %p2940_p6 = scmp.ne.s32.totalorder %s1790_s26, %s2939_s14  ;;  %s3104_s21 = smov [#allocation19]  }
 0x381   : > { %s2943_s29 = sshll.u32 %s3104_s21, 4  ;;  %s2944_s29 = int_to_ptr.vmem [resolvable:$false] %s2943_s29 }
 0x382   : > { %p2941_p11 = pnand %p2940_p6, %p3825_p4  ;;  %s2945_s12 = scalar_lea.vmem %s2944_s29, 256 }
 0x383   : > { %p2946_p7 = scmp.lt.s32.totalorder %s1790_s26, %s2944_s29  ;;  %p2947_p8 = scmp.lt.s32.totalorder %s2945_s12, %s2939_s14 }
 0x384   : > { %p2942_p3 = pneg %p2941_p11 }
 0x385   : > { %p2948_p10 = por %p2947_p8, %p2946_p7 }
 0x387   : > { %p2949_p0 = pnand %p2948_p10, %p2942_p3 }
 0x389   : > { %2952 = shalt.err (!%p2949_p0)
}
 0x38a   : > { %s2953_s28 = scalar_lea.hbm %s1787_s6, 128  ;;  %s2957_s0 = scalar_lea.hbm %s3755_s18, 256 }
 0x38b   : > { %p2954_p2 = scmp.ne.s32.totalorder %s1787_s6, %s2953_s28  ;;  %p2958_p12 = scmp.lt.s32.totalorder %s1787_s6, %s3755_s18 }
 0x38c   : > { %p2959_p13 = scmp.lt.s32.totalorder %s2957_s0, %s2953_s28 }
 0x38d   : > { %p2955_p5 = pnand %p2954_p2, %p3825_p4 }
 0x38e   : > { %p2960_p1 = por %p2959_p13, %p2958_p12 }
 0x38f   : > { %p2956_p9 = pneg %p2955_p5 }
 0x391   : > { %p2961_p6 = pnand %p2960_p1, %p2956_p9 }
 0x393   : > { %2964 = shalt.err (!%p2961_p6)
}
 0x394   : > { %2470 = dma.vmem_to_hbm [thread:$0]  (%p3825_p4), %s1790_s26, 128, %s1787_s6, %s1761_s23   ;;  %v2165_v0 = vld [vmem:[%s3750_s13] ss:$0 sm:$0xff] }
 0x395   : > { %s845_s14 = scalar_lea.vmem [#allocation22], %s3468_s2  ;;  %s3826_s28 = sld [smem:[#allocation53_spill]] }
 0x396   : > { %s1815_s21 = sshll.u32 %s845_s14, 4  ;;  %s3105_s6 = smov [#allocation22]   ;;  %s1816_s21 = int_to_ptr.vmem [resolvable:$true] %s1815_s21 }
 0x397   : > { %s2965_s17 = scalar_lea.vmem %s1816_s21, 128  ;;  %s2969_s26 = sshll.u32 %s3105_s6, 4  ;;  %s2970_s26 = int_to_ptr.vmem [resolvable:$false] %s2969_s26 }
 0x398   : > { %p2966_p11 = scmp.ne.s32.totalorder %s1816_s21, %s2965_s17  ;;  %s2971_s23 = scalar_lea.vmem %s2970_s26, 256 }
 0x399   : > { %p2972_p8 = scmp.lt.s32.totalorder %s1816_s21, %s2970_s26  ;;  %p2973_p10 = scmp.lt.s32.totalorder %s2971_s23, %s2965_s17 }
 0x39a   : > { %p2967_p3 = pnand %p2966_p11, %p3825_p4 }
 0x39b   : > { %s3665_s10 = scalar_lea.hbm %s3826_s28, %s3613_s1  ;;  %p2974_p0 = por %p2973_p10, %p2972_p8 }
 0x39c   : > { %p2968_p7 = pneg %p2967_p3 }
 0x39e   : > { %p2975_p2 = pnand %p2974_p0, %p2968_p7 }
 0x411   : > { %v1527_v52 = vpop.f32.mrf.mxu1 }
 0x412   : > { %v1528_v53 = vadd.f32 %v2165_v0, %v1527_v52 }
 0x413   : > { %v2392_v54 = vpop.f32.mrf.mxu1 }
 0x414   : > { %1758 = vst [vmem:[%s845_s14] sm:$0xff] %v1528_v53 }
 0x415   : > { %v1530_v55 = vpop.f32.mrf.mxu1 }
 0x416   : > { %2978 = shalt.err (!%p2975_p2)
}
 0x417   : > { %s2979_s0 = scalar_lea.hbm %s3665_s10, 128  ;;  %s2983_s16 = scalar_lea.hbm %s3826_s28, 256 }
 0x418   : > { %p2980_p5 = scmp.ne.s32.totalorder %s3665_s10, %s2979_s0  ;;  %p2984_p13 = scmp.lt.s32.totalorder %s3665_s10, %s3826_s28 }
 0x419   : > { %p2985_p1 = scmp.lt.s32.totalorder %s2983_s16, %s2979_s0 }
 0x41a   : > { %p2981_p9 = pnand %p2980_p5, %p3825_p4 }
 0x41b   : > { %p2986_p6 = por %p2985_p1, %p2984_p13 }
 0x41c   : > { %p2982_p12 = pneg %p2981_p9 }
 0x41e   : > { %p2987_p11 = pnand %p2986_p6, %p2982_p12 }
 0x420   : > { %2990 = shalt.err (!%p2987_p11)
}
 0x421   : > { %2472 = dma.vmem_to_hbm [thread:$0]  (%p3825_p4), %s1816_s21, 128, %s3665_s10, %s3623_s5   ;;  %v2393_v56 = vpop.f32.mrf.mxu1 }
 0x422   : > { %s3827_s17 = sld [smem:[#allocation52_spill]]  ;;  %s852_s6 = scalar_lea.vmem [#allocation23], %s3468_s2 }
 0x423   : > { %s1828_s26 = sshll.u32 %s852_s6, 4  ;;  %s3828_s20 = sld [smem:[#allocation54_spill]]  ;;  %s3694_s26 = int_to_ptr.vmem [resolvable:$true] %s1828_s26 }
 0x424   : > { %s1776_s5 = scalar_lea.sflag [#allocation24], %s3465_s22  ;;  %s2991_s21 = scalar_lea.vmem %s3694_s26, 128 }
 0x425   : > { %p2992_p3 = scmp.ne.s32.totalorder %s3694_s26, %s2991_s21  ;;  %s3106_s2 = smov [#allocation23]  }
 0x426   : > { %s2995_s10 = sshll.u32 %s3106_s2, 4  ;;  %s2996_s10 = int_to_ptr.vmem [resolvable:$false] %s2995_s10 }
 0x427   : > { %p2993_p7 = pnand %p2992_p3, %p3825_p4  ;;  %s2997_s16 = scalar_lea.vmem %s2996_s10, 256 }
 0x428   : > { %v2183_v57 = vld [vmem:[%s3827_s17] ss:$0 sm:$0xff]  ;;  %p2998_p10 = scmp.lt.s32.totalorder %s3694_s26, %s2996_s10  ;;  %p2999_p0 = scmp.lt.s32.totalorder %s2997_s16, %s2991_s21 }
 0x429   : > { %s3692_s3 = scalar_lea.hbm %s3828_s20, %s3613_s1  ;;  %p2994_p8 = pneg %p2993_p7 }
 0x42a   : > { %p3000_p2 = por %p2999_p0, %p2998_p10 }
 0x42c   : > { %p3001_p5 = pnand %p3000_p2, %p2994_p8 }
 0x431   : > { %v1752_v58 = vpop.f32.mrf.mxu1 }
 0x432   : > { %v1753_v59 = vadd.f32 %v2183_v57, %v1752_v58 }
 0x433   : > { %v2432_v60 = vpop.f32.mrf.mxu1 }
 0x434   : > { %1759 = vst [vmem:[%s852_s6] sm:$0xff] %v1753_v59 }
 0x435   : > { %v1755_v61 = vpop.f32.mrf.mxu1 }
 0x436   : > { %3004 = shalt.err (!%p3001_p5)
}
 0x437   : > { %s3005_s1 = scalar_lea.hbm %s3692_s3, 128  ;;  %s3009_s14 = scalar_lea.hbm %s3828_s20, 256 }
 0x438   : > { %p3006_p9 = scmp.ne.s32.totalorder %s3692_s3, %s3005_s1  ;;  %p3010_p1 = scmp.lt.s32.totalorder %s3692_s3, %s3828_s20 }
 0x439   : > { %p3011_p6 = scmp.lt.s32.totalorder %s3009_s14, %s3005_s1 }
 0x43a   : > { %p3007_p12 = pnand %p3006_p9, %p3825_p4 }
 0x43b   : > { %p3012_p11 = por %p3011_p6, %p3010_p1 }
 0x43c   : > { %p3008_p13 = pneg %p3007_p12 }
 0x43e   : > { %p3013_p3 = pnand %p3012_p11, %p3008_p13 }
 0x440   : > { %3016 = shalt.err (!%p3013_p3)
}
 0x441   : > { %2473 = dma.vmem_to_hbm [thread:$0]  (%p3825_p4), %s3694_s26, 128, %s3692_s3, %s1776_s5   ;;  %v2433_v62 = vpop.f32.mrf.mxu1 }
 0x442 PF: > { %s3829_s17 = sld [smem:[#allocation35_spill]]  ;;  %p3832_p8 = scmp.ge.s32.totalorder %s3087_s27, 2 }
 0x443   : > { %s3830_s6 = sld [smem:[#allocation39_spill]] }
 0x448   : > { %s1840_s23 = sand.u32 1, %s3829_s17  }
 0x449   : > { %p3831_p7 = scmp.ne.s32.totalorder %s3830_s6, 0  ;;  %s1841_s0 = scalar_lea.sflag [#allocation4], %s1840_s23 }
 0x44b   : > { %p2511_p10 = pnand %p3832_p8, %p3831_p7 }
 0x44d   : > { %p2512_p0 = pneg %p2511_p10 }
 0x44f   : > { %3062 = dma.done.wait (%p2512_p0), %s1841_s0, 128  }
 0x450   : > { %3064 = vsyncadd (%p2512_p0), %s1841_s0, 4294967168  ;;  %s3833_s21 = sadd.s32 4294967294, %s3087_s27  }
 0x451   : > { %s1849_s2 = sand.u32 1, %s3833_s21  }
 0x452   : > { %s1850_s24 = scalar_lea.sflag [#allocation21], %s1849_s2 }
 0x453   : > { %3066 = dma.done.wait (%p2512_p0), %s1850_s24, 256  }
 0x454   : > { %3068 = vsyncadd (%p2512_p0), %s1850_s24, 4294967040  ;;  %s1868_s26 = scalar_lea.sflag [#allocation24], %s1840_s23 }
 0x455   : > { %3070 = dma.done.wait (%p2512_p0), %s1868_s26, 128  }
 0x456   : > { %3072 = vsyncadd (%p2512_p0), %s1868_s26, 4294967168  ;;  %s3834_s27 = sld [smem:[#allocation37_spill]]  ;;  %s3837_s2 = smov %s3079_s25 }
 0x457   : > { %s3835_s3 = sld [smem:[#allocation36_spill]] }
 0x458   : > { %s3836_s26 = sld [smem:[#allocation38_spill]] }
 0x45c   : > { %p48_p4 = scmp.ge.s32.totalorder %s3834_s27, 4  }
 0x45d   : > { %s3838_s25 = smov %s3835_s3 }
 0x45e   :  { %50 = sbr.rel (!%p48_p4) target bundleno = 31 (0x1f), region = 231 }
 0x463   :  { %1873 = vsyncpa [#allocation3], 1 }
 0x464   :  { %1875 = vsyncpa [#allocation3 + $0x1], 1 }
 0x465   :  { %1876 = vsyncpa [#allocation6], 1 }
 0x466   :  { %1878 = vsyncpa [#allocation6 + $0x1], 1 }
 0x467   :  { %1879 = vsyncpa [#allocation9], 1 }
 0x468   :  { %1880 = vsyncpa [#allocation12], 1 }
 0x469   :  { %1881 = vsyncpa [#allocation15], 1 }
 0x46a   :  { %1882 = vsyncpa [#allocation18], 1 }
 0x46b   :  { %1883 = vsyncpa [#allocation4], 1 }
 0x46c   :  { %1885 = vsyncpa [#allocation4 + $0x1], 1 }
 0x46d   :  { %1886 = vsyncpa [#allocation21], 1 }
 0x46e   :  { %1888 = vsyncpa [#allocation21 + $0x1], 1 }
 0x46f   :  { %1889 = vsyncpa [#allocation24], 1 }
 0x470   :  { %1891 = vsyncpa [#allocation24 + $0x1], 1 }

</bundles_post_ra>
